<compile_context>
chip_gen: v7x
topology: tpu7x:2x2x1
jax: 0.10.0
libtpu: 0.0.40
codegen_flags: <defaults>
</compile_context>

<pallas_src>
import functools

import jax
import jax.numpy as jnp
import numpy as np
from jax import lax
from jax.experimental import pallas as pl
from jax.experimental.pallas import tpu as pltpu


def _bottleneck_kernel(x_ref, w1_ref, w2_ref, s1_ref, b1_ref, s2_ref, b2_ref,
                       o_ref, s_ref, *, H, W, Cin, Chid, Cout):
    """One batch element: y = x + SiLU(BN2(Conv3x3(SiLU(BN1(Conv1x1(x))))))."""
    C3 = 3 * Chid
    bf16 = jnp.bfloat16

    # ---- cv1: 1x1 conv == channel matmul (bf16 MXU operands, f32 accum) ----
    xin = x_ref[0].reshape(H * W, Cin).astype(bf16)
    y1 = jnp.dot(xin, w1_ref[...], preferred_element_type=jnp.float32)
    y1 = y1 * s1_ref[...] + b1_ref[...]           # folded BN1 (f32)
    y1 = y1 * jax.nn.sigmoid(y1)                  # SiLU (f32, sigmoid on EUP)
    y1 = y1.reshape(H, W, Chid).astype(bf16)

    # ---- build the shift-concatenated operand for the 3x3 conv -------------
    # s_ref[r, w, dx*Chid + c] == y1_padded[r, w + dx, c]; the dy shift below
    # is a free leading-dim slice.  All stores are full-width over the tiled
    # (W, 3*Chid) dims; only the two small halo rows get re-zeroed each step.
    zcol = jnp.zeros((H, 1, Chid), bf16)
    left = jnp.concatenate([zcol, y1[:, :W - 1, :]], axis=1)     # dx = 0 taps
    right = jnp.concatenate([y1[:, 1:, :], zcol], axis=1)        # dx = 2 taps
    s_ref[0:1, :, :] = jnp.zeros((1, W, C3), bf16)               # top halo row
    s_ref[H + 1:H + 2, :, :] = jnp.zeros((1, W, C3), bf16)       # bottom halo
    s_ref[1:H + 1, :, :] = jnp.concatenate([left, y1, right], axis=-1)

    # ---- cv2: 3x3 conv as 3 matmuls with K = 3*Chid (was 9 with K = Chid) --
    acc = None
    for dy in range(3):
        patch = s_ref[dy:dy + H].reshape(H * W, C3)      # contiguous slab
        part = jnp.dot(patch, w2_ref[dy],
                       preferred_element_type=jnp.float32)
        acc = part if acc is None else acc + part        # back-to-back chain

    y2 = acc * s2_ref[...] + b2_ref[...]          # folded BN2 (f32)
    y2 = y2 * jax.nn.sigmoid(y2)                  # SiLU

    # ---- residual: re-read x here instead of holding it across the convs ---
    o_ref[0] = (x_ref[0] + y2.reshape(H, W, Cout)).astype(o_ref.dtype)


def bottleneck_pallas(x_nhwc, w1, w2cat, s1, b1, s2, b2):
    """x_nhwc: (N, H, W, Cin) f32; w1: (Cin, Chid) bf16;
    w2cat: (3, 3*Chid, Cout) bf16 (per-dy, dx-concatenated along K);
    s*/b*: (1, C) f32 folded BatchNorm scale/bias."""
    N, H, W, Cin = x_nhwc.shape
    Chid = w1.shape[1]
    Cout = w2cat.shape[2]
    assert Cin == Cout, "residual requires in_channels == out_channels"
    assert w2cat.shape == (3, 3 * Chid, Cout)

    kernel = functools.partial(_bottleneck_kernel,
                               H=H, W=W, Cin=Cin, Chid=Chid, Cout=Cout)

    return pl.pallas_call(
        kernel,
        out_shape=jax.ShapeDtypeStruct((N, H, W, Cout), x_nhwc.dtype),
        grid_spec=pltpu.PrefetchScalarGridSpec(
            num_scalar_prefetch=0,
            grid=(N,),
            in_specs=[
                pl.BlockSpec((1, H, W, Cin), lambda n: (n, 0, 0, 0)),       # x
                pl.BlockSpec((Cin, Chid), lambda n: (0, 0)),                # w1
                pl.BlockSpec((3, 3 * Chid, Cout), lambda n: (0, 0, 0)),     # w2
                pl.BlockSpec((1, Chid), lambda n: (0, 0)),                  # s1
                pl.BlockSpec((1, Chid), lambda n: (0, 0)),                  # b1
                pl.BlockSpec((1, Cout), lambda n: (0, 0)),                  # s2
                pl.BlockSpec((1, Cout), lambda n: (0, 0)),                  # b2
            ],
            out_specs=pl.BlockSpec((1, H, W, Cout), lambda n: (n, 0, 0, 0)),
            # Shift-concatenated bf16 scratch (half the footprint of f32).
            scratch_shapes=[pltpu.VMEM((H + 2, W, 3 * Chid), jnp.bfloat16)],
        ),
        compiler_params=pltpu.CompilerParams(
            dimension_semantics=("parallel",)),
    )(x_nhwc, w1, w2cat, s1, b1, s2, b2)


def _fold_bn(gamma, beta, mean, var, eps=1e-5):
    scale = gamma / jnp.sqrt(var + eps)
    bias = beta - mean * scale
    return scale, bias


def bottleneck_reference(x_nchw, w1_oihw, w2_oihw, s1, b1, s2, b2):
    """Plain-JAX f32 reference (NCHW, like PyTorch)."""
    y = lax.conv_general_dilated(x_nchw, w1_oihw, (1, 1), "VALID",
                                 dimension_numbers=("NCHW", "OIHW", "NCHW"))
    y = y * s1[None, :, None, None] + b1[None, :, None, None]
    y = y * jax.nn.sigmoid(y)
    y = lax.conv_general_dilated(y, w2_oihw, (1, 1), ((1, 1), (1, 1)),
                                 dimension_numbers=("NCHW", "OIHW", "NCHW"))
    y = y * s2[None, :, None, None] + b2[None, :, None, None]
    y = y * jax.nn.sigmoid(y)
    return x_nchw + y


if __name__ == "__main__":
    # Small shapes consistent with the module (residual => Cin == Cout).
    N, C, H, W = 2, 8, 16, 16
    Cin = Cout = C
    Chid = Cout // 2

    key = jax.random.PRNGKey(0)
    k_x, k_w1, k_w2 = jax.random.split(key, 3)

    x_nchw = jax.random.normal(k_x, (N, Cin, H, W), dtype=jnp.float32)

    # Conv weights (PyTorch OIHW), deterministic.
    w1_oihw = jax.random.normal(k_w1, (Chid, Cin, 1, 1), jnp.float32) * 0.1
    w2_oihw = jax.random.normal(k_w2, (Cout, Chid, 3, 3), jnp.float32) * 0.1

    # BatchNorm params (inference stats), deterministic and non-trivial.
    g1 = 1.0 + 0.10 * jnp.arange(Chid, dtype=jnp.float32)
    be1 = 0.01 * jnp.arange(Chid, dtype=jnp.float32)
    m1 = 0.05 * jnp.arange(Chid, dtype=jnp.float32)
    v1 = 1.0 + 0.02 * jnp.arange(Chid, dtype=jnp.float32)
    g2 = 1.0 - 0.05 * jnp.arange(Cout, dtype=jnp.float32)
    be2 = -0.02 * jnp.arange(Cout, dtype=jnp.float32)
    m2 = 0.03 * jnp.arange(Cout, dtype=jnp.float32)
    v2 = 1.0 + 0.01 * jnp.arange(Cout, dtype=jnp.float32)

    s1, b1 = _fold_bn(g1, be1, m1, v1)
    s2, b2 = _fold_bn(g2, be2, m2, v2)

    # Repack weights for the NHWC matmul kernel (bf16 MXU operands).
    w1_mat = jnp.transpose(w1_oihw[:, :, 0, 0], (1, 0)).astype(jnp.bfloat16)
    w2_hwio = jnp.transpose(w2_oihw, (2, 3, 1, 0))              # (3,3,Chid,Cout)
    # Concatenate the dx taps along K so each dy is one K=3*Chid matmul;
    # channel ordering matches the kernel's scratch layout (dx*Chid + c).
    w2_cat = w2_hwio.reshape(3, 3 * Chid, Cout).astype(jnp.bfloat16)

    x_nhwc = jnp.transpose(x_nchw, (0, 2, 3, 1))                # NCHW -> NHWC
    out_nhwc = bottleneck_pallas(x_nhwc, w1_mat, w2_cat,
                                 s1[None, :], b1[None, :],
                                 s2[None, :], b2[None, :])
    out_nchw = jnp.transpose(out_nhwc, (0, 3, 1, 2))            # back to NCHW
    out_nchw = jax.block_until_ready(out_nchw)

    ref = jax.block_until_ready(
        bottleneck_reference(x_nchw, w1_oihw, w2_oihw, s1, b1, s2, b2))

    # bf16 MXU operands vs. f32 reference => looser tolerance.
    np.testing.assert_allclose(np.asarray(out_nchw), np.asarray(ref),
                               rtol=2e-2, atol=2e-2)
    print("KERNEL_OK")
</pallas_src>

<mosaic_0001>
module attributes {stable_mosaic.version = 11 : i64} {
  func.func @_bottleneck_kernel(%arg0: i32, %arg1: memref<1x16x16x8xf32, #tpu.memory_space<vmem>>, %arg2: memref<8x4xbf16, #tpu.memory_space<vmem>>, %arg3: memref<3x12x8xbf16, #tpu.memory_space<vmem>>, %arg4: memref<1x4xf32, #tpu.memory_space<vmem>>, %arg5: memref<1x4xf32, #tpu.memory_space<vmem>>, %arg6: memref<1x8xf32, #tpu.memory_space<vmem>>, %arg7: memref<1x8xf32, #tpu.memory_space<vmem>>, %arg8: memref<1x16x16x8xf32, #tpu.memory_space<vmem>>, %arg9: memref<18x16x12xbf16, #tpu.memory_space<vmem>>) attributes {dimension_semantics = [#tpu.dimension_semantics<parallel>], iteration_bounds = array<i64: 2>, scalar_prefetch = 0 : i64, scratch_operands = 1 : i64, tpu.core_type = #tpu.core_type<tc>, window_params = [{transform_indices = @transform_0, window_bounds = array<i64: 1, 16, 16, 8>}, {pipeline_mode = #tpu.pipeline_mode<synchronous>, transform_indices = @transform_1, window_bounds = array<i64: 8, 4>}, {pipeline_mode = #tpu.pipeline_mode<synchronous>, transform_indices = @transform_2, window_bounds = array<i64: 3, 12, 8>}, {pipeline_mode = #tpu.pipeline_mode<synchronous>, transform_indices = @transform_3, window_bounds = array<i64: 1, 4>}, {pipeline_mode = #tpu.pipeline_mode<synchronous>, transform_indices = @transform_4, window_bounds = array<i64: 1, 4>}, {pipeline_mode = #tpu.pipeline_mode<synchronous>, transform_indices = @transform_5, window_bounds = array<i64: 1, 8>}, {pipeline_mode = #tpu.pipeline_mode<synchronous>, transform_indices = @transform_6, window_bounds = array<i64: 1, 8>}, {transform_indices = @transform_7, window_bounds = array<i64: 1, 16, 16, 8>}]} {
    %c0 = arith.constant 0 : index
    %c0_0 = arith.constant 0 : index
    %c0_1 = arith.constant 0 : index
    %c0_2 = arith.constant 0 : index
    %0 = vector.load %arg1[%c0, %c0_0, %c0_1, %c0_2] : memref<1x16x16x8xf32, #tpu.memory_space<vmem>>, vector<1x16x16x8xf32>
    %1 = vector.shape_cast %0 : vector<1x16x16x8xf32> to vector<16x16x8xf32>
    %2 = vector.shape_cast %1 : vector<16x16x8xf32> to vector<256x8xf32>
    %3 = arith.truncf %2 : vector<256x8xf32> to vector<256x8xbf16>
    %c0_3 = arith.constant 0 : index
    %c0_4 = arith.constant 0 : index
    %4 = vector.load %arg2[%c0_3, %c0_4] : memref<8x4xbf16, #tpu.memory_space<vmem>>, vector<8x4xbf16>
    %cst = arith.constant dense<0.000000e+00> : vector<256x4xf32>
    %5 = tpu.matmul %3, %4, %cst {dimension_numbers = #tpu.dot_dimension_numbers<[1], [0], [0], [1], [0, 0, 1, 1], [], []>} : vector<256x8xbf16>, vector<8x4xbf16>, vector<256x4xf32> -> vector<256x4xf32>
    %c0_5 = arith.constant 0 : index
    %c0_6 = arith.constant 0 : index
    %6 = vector.load %arg4[%c0_5, %c0_6] : memref<1x4xf32, #tpu.memory_space<vmem>>, vector<1x4xf32>
    %7 = vector.broadcast %6 : vector<1x4xf32> to vector<256x4xf32>
    %8 = arith.mulf %5, %7 : vector<256x4xf32>
    %c0_7 = arith.constant 0 : index
    %c0_8 = arith.constant 0 : index
    %9 = vector.load %arg5[%c0_7, %c0_8] : memref<1x4xf32, #tpu.memory_space<vmem>>, vector<1x4xf32>
    %10 = vector.broadcast %9 : vector<1x4xf32> to vector<256x4xf32>
    %11 = arith.addf %8, %10 : vector<256x4xf32>
    %12 = arith.negf %11 : vector<256x4xf32>
    %13 = math.exp %12 : vector<256x4xf32>
    %cst_9 = arith.constant 1.000000e+00 : f32
    %14 = vector.broadcast %cst_9 : f32 to vector<256x4xf32>
    %15 = arith.addf %14, %13 : vector<256x4xf32>
    %16 = arith.divf %14, %15 : vector<256x4xf32>
    %17 = arith.mulf %11, %16 : vector<256x4xf32>
    %18 = vector.shape_cast %17 : vector<256x4xf32> to vector<16x16x4xf32>
    %19 = arith.truncf %18 : vector<16x16x4xf32> to vector<16x16x4xbf16>
    %cst_10 = arith.constant 0.000000e+00 : bf16
    %20 = vector.broadcast %cst_10 : bf16 to vector<16x1x4xbf16>
    %21 = vector.extract_strided_slice %19 {offsets = [0, 0, 0], sizes = [16, 15, 4], strides = [1, 1, 1]} : vector<16x16x4xbf16> to vector<16x15x4xbf16>
    %22 = tpu.concatenate %20, %21 in 1 : vector<16x1x4xbf16>, vector<16x15x4xbf16> -> vector<16x16x4xbf16>
    %23 = vector.extract_strided_slice %19 {offsets = [0, 1, 0], sizes = [16, 15, 4], strides = [1, 1, 1]} : vector<16x16x4xbf16> to vector<16x15x4xbf16>
    %24 = tpu.concatenate %23, %20 in 1 : vector<16x15x4xbf16>, vector<16x1x4xbf16> -> vector<16x16x4xbf16>
    %cst_11 = arith.constant 0.000000e+00 : bf16
    %25 = vector.broadcast %cst_11 : bf16 to vector<1x16x12xbf16>
    %c0_12 = arith.constant 0 : index
    %c0_13 = arith.constant 0 : index
    %c0_14 = arith.constant 0 : index
    %26 = vector.load %arg9[%c0_12, %c0_13, %c0_14] : memref<18x16x12xbf16, #tpu.memory_space<vmem>>, vector<1x16x12xbf16>
    tpu.vector_store %arg9[%c0_12, %c0_13, %c0_14], %25 {strides = array<i32>} : memref<18x16x12xbf16, #tpu.memory_space<vmem>>, vector<1x16x12xbf16>,
    %cst_15 = arith.constant 0.000000e+00 : bf16
    %27 = vector.broadcast %cst_15 : bf16 to vector<1x16x12xbf16>
    %c17 = arith.constant 17 : index
    %c0_16 = arith.constant 0 : index
    %c0_17 = arith.constant 0 : index
    %28 = vector.load %arg9[%c17, %c0_16, %c0_17] : memref<18x16x12xbf16, #tpu.memory_space<vmem>>, vector<1x16x12xbf16>
    tpu.vector_store %arg9[%c17, %c0_16, %c0_17], %27 {strides = array<i32>} : memref<18x16x12xbf16, #tpu.memory_space<vmem>>, vector<1x16x12xbf16>,
    %29 = tpu.concatenate %22, %19, %24 in 2 : vector<16x16x4xbf16>, vector<16x16x4xbf16>, vector<16x16x4xbf16> -> vector<16x16x12xbf16>
    %c1 = arith.constant 1 : index
    %c0_18 = arith.constant 0 : index
    %c0_19 = arith.constant 0 : index
    %30 = vector.load %arg9[%c1, %c0_18, %c0_19] : memref<18x16x12xbf16, #tpu.memory_space<vmem>>, vector<16x16x12xbf16>
    tpu.vector_store %arg9[%c1, %c0_18, %c0_19], %29 {strides = array<i32>} : memref<18x16x12xbf16, #tpu.memory_space<vmem>>, vector<16x16x12xbf16>,
    %c0_20 = arith.constant 0 : index
    %c0_21 = arith.constant 0 : index
    %c0_22 = arith.constant 0 : index
    %31 = vector.load %arg9[%c0_20, %c0_21, %c0_22] : memref<18x16x12xbf16, #tpu.memory_space<vmem>>, vector<16x16x12xbf16>
    %32 = vector.shape_cast %31 : vector<16x16x12xbf16> to vector<256x12xbf16>
    %c0_23 = arith.constant 0 : index
    %c0_24 = arith.constant 0 : index
    %c0_25 = arith.constant 0 : index
    %33 = vector.load %arg3[%c0_23, %c0_24, %c0_25] : memref<3x12x8xbf16, #tpu.memory_space<vmem>>, vector<1x12x8xbf16>
    %34 = vector.shape_cast %33 : vector<1x12x8xbf16> to vector<12x8xbf16>
    %cst_26 = arith.constant dense<0.000000e+00> : vector<256x8xf32>
    %35 = tpu.matmul %32, %34, %cst_26 {dimension_numbers = #tpu.dot_dimension_numbers<[1], [0], [0], [1], [0, 0, 1, 1], [], []>} : vector<256x12xbf16>, vector<12x8xbf16>, vector<256x8xf32> -> vector<256x8xf32>
    %c1_27 = arith.constant 1 : index
    %c0_28 = arith.constant 0 : index
    %c0_29 = arith.constant 0 : index
    %36 = vector.load %arg9[%c1_27, %c0_28, %c0_29] : memref<18x16x12xbf16, #tpu.memory_space<vmem>>, vector<16x16x12xbf16>
    %37 = vector.shape_cast %36 : vector<16x16x12xbf16> to vector<256x12xbf16>
    %c1_30 = arith.constant 1 : index
    %c0_31 = arith.constant 0 : index
    %c0_32 = arith.constant 0 : index
    %38 = vector.load %arg3[%c1_30, %c0_31, %c0_32] : memref<3x12x8xbf16, #tpu.memory_space<vmem>>, vector<1x12x8xbf16>
    %39 = vector.shape_cast %38 : vector<1x12x8xbf16> to vector<12x8xbf16>
    %cst_33 = arith.constant dense<0.000000e+00> : vector<256x8xf32>
    %40 = tpu.matmul %37, %39, %cst_33 {dimension_numbers = #tpu.dot_dimension_numbers<[1], [0], [0], [1], [0, 0, 1, 1], [], []>} : vector<256x12xbf16>, vector<12x8xbf16>, vector<256x8xf32> -> vector<256x8xf32>
    %41 = arith.addf %35, %40 : vector<256x8xf32>
    %c2 = arith.constant 2 : index
    %c0_34 = arith.constant 0 : index
    %c0_35 = arith.constant 0 : index
    %42 = vector.load %arg9[%c2, %c0_34, %c0_35] : memref<18x16x12xbf16, #tpu.memory_space<vmem>>, vector<16x16x12xbf16>
    %43 = vector.shape_cast %42 : vector<16x16x12xbf16> to vector<256x12xbf16>
    %c2_36 = arith.constant 2 : index
    %c0_37 = arith.constant 0 : index
    %c0_38 = arith.constant 0 : index
    %44 = vector.load %arg3[%c2_36, %c0_37, %c0_38] : memref<3x12x8xbf16, #tpu.memory_space<vmem>>, vector<1x12x8xbf16>
    %45 = vector.shape_cast %44 : vector<1x12x8xbf16> to vector<12x8xbf16>
    %cst_39 = arith.constant dense<0.000000e+00> : vector<256x8xf32>
    %46 = tpu.matmul %43, %45, %cst_39 {dimension_numbers = #tpu.dot_dimension_numbers<[1], [0], [0], [1], [0, 0, 1, 1], [], []>} : vector<256x12xbf16>, vector<12x8xbf16>, vector<256x8xf32> -> vector<256x8xf32>
    %47 = arith.addf %41, %46 : vector<256x8xf32>
    %c0_40 = arith.constant 0 : index
    %c0_41 = arith.constant 0 : index
    %48 = vector.load %arg6[%c0_40, %c0_41] : memref<1x8xf32, #tpu.memory_space<vmem>>, vector<1x8xf32>
    %49 = vector.broadcast %48 : vector<1x8xf32> to vector<256x8xf32>
    %50 = arith.mulf %47, %49 : vector<256x8xf32>
    %c0_42 = arith.constant 0 : index
    %c0_43 = arith.constant 0 : index
    %51 = vector.load %arg7[%c0_42, %c0_43] : memref<1x8xf32, #tpu.memory_space<vmem>>, vector<1x8xf32>
    %52 = vector.broadcast %51 : vector<1x8xf32> to vector<256x8xf32>
    %53 = arith.addf %50, %52 : vector<256x8xf32>
    %54 = arith.negf %53 : vector<256x8xf32>
    %55 = math.exp %54 : vector<256x8xf32>
    %cst_44 = arith.constant 1.000000e+00 : f32
    %56 = vector.broadcast %cst_44 : f32 to vector<256x8xf32>
    %57 = arith.addf %56, %55 : vector<256x8xf32>
    %58 = arith.divf %56, %57 : vector<256x8xf32>
    %59 = arith.mulf %53, %58 : vector<256x8xf32>
    %c0_45 = arith.constant 0 : index
    %c0_46 = arith.constant 0 : index
    %c0_47 = arith.constant 0 : index
    %c0_48 = arith.constant 0 : index
    %60 = vector.load %arg1[%c0_45, %c0_46, %c0_47, %c0_48] : memref<1x16x16x8xf32, #tpu.memory_space<vmem>>, vector<1x16x16x8xf32>
    %61 = vector.shape_cast %60 : vector<1x16x16x8xf32> to vector<16x16x8xf32>
    %62 = vector.shape_cast %59 : vector<256x8xf32> to vector<16x16x8xf32>
    %63 = arith.addf %61, %62 : vector<16x16x8xf32>
    %c0_49 = arith.constant 0 : index
    %c0_50 = arith.constant 0 : index
    %c0_51 = arith.constant 0 : index
    %c0_52 = arith.constant 0 : index
    %64 = vector.load %arg8[%c0_49, %c0_50, %c0_51, %c0_52] : memref<1x16x16x8xf32, #tpu.memory_space<vmem>>, vector<1x16x16x8xf32>
    %65 = vector.shape_cast %64 : vector<1x16x16x8xf32> to vector<16x16x8xf32>
    %66 = vector.shape_cast %63 : vector<16x16x8xf32> to vector<1x16x16x8xf32>
    tpu.vector_store %arg8[%c0_49, %c0_50, %c0_51, %c0_52], %66 {strides = array<i32>} : memref<1x16x16x8xf32, #tpu.memory_space<vmem>>, vector<1x16x16x8xf32>,
    return
  }
  func.func @transform_0(%arg0: i32) -> (i32, i32, i32, i32) {
    %c0_i32 = arith.constant 0 : i32
    %c0_i32_0 = arith.constant 0 : i32
    %c0_i32_1 = arith.constant 0 : i32
    %c0_i32_2 = arith.constant 0 : i32
    return %arg0, %c0_i32, %c0_i32_0, %c0_i32_1 : i32, i32, i32, i32
  }
  func.func @transform_1(%arg0: i32) -> (i32, i32) {
    %c0_i32 = arith.constant 0 : i32
    %c0_i32_0 = arith.constant 0 : i32
    %c0_i32_1 = arith.constant 0 : i32
    return %c0_i32, %c0_i32_0 : i32, i32
  }
  func.func @transform_2(%arg0: i32) -> (i32, i32, i32) {
    %c0_i32 = arith.constant 0 : i32
    %c0_i32_0 = arith.constant 0 : i32
    %c0_i32_1 = arith.constant 0 : i32
    %c0_i32_2 = arith.constant 0 : i32
    return %c0_i32, %c0_i32_0, %c0_i32_1 : i32, i32, i32
  }
  func.func @transform_3(%arg0: i32) -> (i32, i32) {
    %c0_i32 = arith.constant 0 : i32
    %c0_i32_0 = arith.constant 0 : i32
    %c0_i32_1 = arith.constant 0 : i32
    return %c0_i32, %c0_i32_0 : i32, i32
  }
  func.func @transform_4(%arg0: i32) -> (i32, i32) {
    %c0_i32 = arith.constant 0 : i32
    %c0_i32_0 = arith.constant 0 : i32
    %c0_i32_1 = arith.constant 0 : i32
    return %c0_i32, %c0_i32_0 : i32, i32
  }
  func.func @transform_5(%arg0: i32) -> (i32, i32) {
    %c0_i32 = arith.constant 0 : i32
    %c0_i32_0 = arith.constant 0 : i32
    %c0_i32_1 = arith.constant 0 : i32
    return %c0_i32, %c0_i32_0 : i32, i32
  }
  func.func @transform_6(%arg0: i32) -> (i32, i32) {
    %c0_i32 = arith.constant 0 : i32
    %c0_i32_0 = arith.constant 0 : i32
    %c0_i32_1 = arith.constant 0 : i32
    return %c0_i32, %c0_i32_0 : i32, i32
  }
  func.func @transform_7(%arg0: i32) -> (i32, i32, i32, i32) {
    %c0_i32 = arith.constant 0 : i32
    %c0_i32_0 = arith.constant 0 : i32
    %c0_i32_1 = arith.constant 0 : i32
    %c0_i32_2 = arith.constant 0 : i32
    return %arg0, %c0_i32, %c0_i32_0, %c0_i32_1 : i32, i32, i32, i32
  }
}

</mosaic_0001>

<bundles_post_ra>
// kernel: tpu_custom_call.1
= control target key start
LH: loop header
LB: loop body
LE: loop exit
PB: predicated region body
PF: predicated region fallthrough
CT: control target
= control target key end

     0   :  { %s3228_s24 = smov 0   ;;  %s4351_s0 = inlined_call_operand.vmem [shape: f32[2,16,16,8], index: 0, kind: input, shape index: {}]   ;;  %s4352_s1 = inlined_call_operand.vmem [shape: bf16[8,4], index: 1, kind: input, shape index: {}]   ;;  %s4353_s2 = inlined_call_operand.vmem [shape: bf16[3,12,8], index: 2, kind: input, shape index: {}]   ;;  %s4354_s3 = inlined_call_operand.vmem [shape: f32[1,4], index: 3, kind: input, shape index: {}]   ;;  %s4355_s4 = inlined_call_operand.vmem [shape: f32[1,4], index: 4, kind: input, shape index: {}]   ;;  %s4356_s5 = inlined_call_operand.vmem [shape: f32[1,8], index: 5, kind: input, shape index: {}]   ;;  %s4357_s6 = inlined_call_operand.vmem [shape: f32[1,8], index: 6, kind: input, shape index: {}]   ;;  %s4358_s7 = inlined_call_operand.vmem [shape: f32[2,16,16,8], index: 7, kind: output, shape index: {}]  }
   0x1 LB: > { %s2483_s25 = sadd.s32 4294967295, %s3183_s24   ;;  %p2487_p0 = scmp.ge.s32.totalorder %s3183_s24, 1  ;;  %s3183_s24 = sphi %s3228_s24, %s17_s24  }
   0x2   : > { %p237_p1 = scmp.lt.s32.totalorder %s3183_s24, 3 }
   0x4   : > { %p238_p2 = pnand %p2487_p0, %p237_p1 }
   0x5   : > { %v328_v0 = vld [vmem:[%s4352_s1] sm:$0xf] (!%p238_p2)  ;;  %vm378_vm0 = vcmask (!%p238_p2), 1043456   ;;  %p269_p3 = scmp.lt.s32.totalorder (!%p238_p2), %s2483_s25, 1  ;;  %vm329_vm1 = vcmask (!%p238_p2), 64512   ;;  %s3185_s13 = smov (!%p238_p2), 4  }
   0x6   : > { %241 = sbr.rel (%p238_p2) target bundleno = 792 (0x318), region = 48  ;;  %2903 = vmatprep.subr.msk.bf16.mxu0 (!%p238_p2), %vm378_vm0, %v328_v0  ;;  %v380_v1 = vsel (!%p238_p2), %vm378_vm0, %v328_v0, 0  ;;  %v3300_v50 = vld [vmem:[%s4354_s3] ss:$0 sm:$0xff] (!%p238_p2)  ;;  %vm1056_vm2 = vcmask (!%p238_p2), 1047552   ;;  %s3186_s14 = smov (!%p238_p2), 8  }
   0x7   : > { %2704 = vmatpush3.bf16.msra.mxu0 (!%p238_p2), %v380_v1  ;;  %v3305_v52 = vld [vmem:[%s4355_s4] ss:$0 sm:$0xff] (!%p238_p2)  ;;  %vm1057_vm3 = vsmask.f32 (!%p238_p2), 7424  ;;  %vm1075_vm5 = vcmask (!%p238_p2), 97280   ;;  %vm1379_vm6 = vcmask (!%p238_p2), 1045504  }
   0x8   : > { %vm3451_vm4 = vmand (!%p238_p2), %vm1056_vm2, %vm1057_vm3  ;;  %vm989_vm7 = vcmask (!%p238_p2), 1040384   ;;  %vm990_vm8 = vsmask.f32 (!%p238_p2), 256  ;;  %vm1175_vm10 = vcmask (!%p238_p2), 31744  }
   0x9   : > { %vm3767_vm9 = vmand (!%p238_p2), %vm989_vm7, %vm990_vm8 }
   0xd   : > { %s4364_s25 = smov (!%p269_p3, %s2483_s25), 1 }
   0xe   : > { %s2633_s28 = sshll.u32 %s4364_s25, 8 }
   0xf   : > { %s3247_s8 = scalar_lea.vmem %s4351_s0, %s2633_s28  ;;  %s4125_s30 = scalar_lea.vmem %s4358_s7, %s2633_s28 }
  0x10   : > { %v280_v2 = vld [vmem:[%s3247_s8] sm:$0xff]  ;;  %v281_v3 = vld [vmem:[%s3247_s8 + $0x8] sm:$0xff]  ;;  %v282_v4 = vld [vmem:[%s3247_s8 + $0x10] sm:$0xff] }
  0x11   : > { %v312_v5 = vpack.c.bf16 %v281_v3, %v280_v2  ;;  %v283_v6 = vld [vmem:[%s3247_s8 + $0x18] sm:$0xff]  ;;  %v284_v7 = vld [vmem:[%s3247_s8 + $0x20] sm:$0xff]  ;;  %v285_v8 = vld [vmem:[%s3247_s8 + $0x28] sm:$0xff] }
  0x12   : > { %v313_v9 = vpack.c.bf16 %v283_v6, %v282_v4  ;;  %v314_v10 = vpack.c.bf16 %v285_v8, %v284_v7  ;;  %v286_v11 = vld [vmem:[%s3247_s8 + $0x30] sm:$0xff]  ;;  %v287_v12 = vld [vmem:[%s3247_s8 + $0x38] sm:$0xff]  ;;  %v288_v13 = vld [vmem:[%s3247_s8 + $0x40] sm:$0xff] }
  0x13   : > { %2705 = vmatprep.mubr.msk.bf16.mxu0 %vm329_vm1, %v312_v5  ;;  %v289_v14 = vld [vmem:[%s3247_s8 + $0x48] sm:$0xff]  ;;  %v315_v15 = vpack.c.bf16 %v287_v12, %v286_v11  ;;  %v290_v17 = vld [vmem:[%s3247_s8 + $0x50] sm:$0xff]  ;;  %v291_v18 = vld [vmem:[%s3247_s8 + $0x58] sm:$0xff] }
  0x14   : > { %2706 = vmatmul.mubr.msk.bf16.vlgmr.msra.gmra.mrb[0].mxu0 %vm329_vm1, %v313_v9  ;;  %v316_v16 = vpack.c.bf16 %v289_v14, %v288_v13  ;;  %v292_v19 = vld [vmem:[%s3247_s8 + $0x60] sm:$0xff]  ;;  %v293_v20 = vld [vmem:[%s3247_s8 + $0x68] sm:$0xff]  ;;  %v317_v21 = vpack.c.bf16 %v291_v18, %v290_v17  ;;  %v294_v23 = vld [vmem:[%s3247_s8 + $0x70] sm:$0xff] }
  0x15   : > { %2709 = vmatprep.mubr.msk.bf16.mxu0 %vm329_vm1, %v314_v10  ;;  %v318_v22 = vpack.c.bf16 %v293_v20, %v292_v19  ;;  %v295_v24 = vld [vmem:[%s3247_s8 + $0x78] sm:$0xff]  ;;  %v296_v25 = vld [vmem:[%s3247_s8 + $0x80] sm:$0xff]  ;;  %v297_v26 = vld [vmem:[%s3247_s8 + $0x88] sm:$0xff] }
  0x16   : > { %v319_v27 = vpack.c.bf16 %v295_v24, %v294_v23  ;;  %v320_v28 = vpack.c.bf16 %v297_v26, %v296_v25  ;;  %v298_v29 = vld [vmem:[%s3247_s8 + $0x90] sm:$0xff]  ;;  %v299_v30 = vld [vmem:[%s3247_s8 + $0x98] sm:$0xff]  ;;  %v300_v31 = vld [vmem:[%s3247_s8 + $0xa0] sm:$0xff] }
  0x17   : > { %v301_v32 = vld [vmem:[%s3247_s8 + $0xa8] sm:$0xff]  ;;  %v321_v33 = vpack.c.bf16 %v299_v30, %v298_v29  ;;  %v302_v35 = vld [vmem:[%s3247_s8 + $0xb0] sm:$0xff]  ;;  %v303_v36 = vld [vmem:[%s3247_s8 + $0xb8] sm:$0xff] }
  0x18   : > { %v322_v34 = vpack.c.bf16 %v301_v32, %v300_v31  ;;  %v304_v37 = vld [vmem:[%s3247_s8 + $0xc0] sm:$0xff]  ;;  %v305_v38 = vld [vmem:[%s3247_s8 + $0xc8] sm:$0xff]  ;;  %v323_v39 = vpack.c.bf16 %v303_v36, %v302_v35  ;;  %v306_v41 = vld [vmem:[%s3247_s8 + $0xd0] sm:$0xff] }
  0x19   : > { %v324_v40 = vpack.c.bf16 %v305_v38, %v304_v37  ;;  %v307_v42 = vld [vmem:[%s3247_s8 + $0xd8] sm:$0xff]  ;;  %v308_v43 = vld [vmem:[%s3247_s8 + $0xe0] sm:$0xff]  ;;  %v309_v44 = vld [vmem:[%s3247_s8 + $0xe8] sm:$0xff] }
  0x1a   : > { %v325_v45 = vpack.c.bf16 %v307_v42, %v306_v41  ;;  %v326_v46 = vpack.c.bf16 %v309_v44, %v308_v43  ;;  %v310_v47 = vld [vmem:[%s3247_s8 + $0xf0] sm:$0xff]  ;;  %v311_v48 = vld [vmem:[%s3247_s8 + $0xf8] sm:$0xff] }
  0x1b   : > { %v327_v49 = vpack.c.bf16 %v311_v48, %v310_v47 }
  0x1c   : > { %2710 = vmatmul.mubr.msk.bf16.gmra.mrb[4].mxu0 %vm329_vm1, %v315_v15 }
  0x1d   : > { %2713 = vmatprep.mubr.msk.bf16.mxu0 %vm329_vm1, %v316_v16 }
  0x24   : > { %2714 = vmatmul.mubr.msk.bf16.gmra.mrb[8].mxu0 %vm329_vm1, %v317_v21 }
  0x25   : > { %2717 = vmatprep.mubr.msk.bf16.mxu0 %vm329_vm1, %v318_v22 }
  0x2c   : > { %2718 = vmatmul.mubr.msk.bf16.gmra.mrb[12].mxu0 %vm329_vm1, %v319_v27 }
  0x2d   : > { %2721 = vmatprep.mubr.msk.bf16.mxu0 %vm329_vm1, %v320_v28 }
  0x34   : > { %2722 = vmatmul.mubr.msk.bf16.gmra.mrb[16].mxu0 %vm329_vm1, %v321_v33 }
  0x35   : > { %2725 = vmatprep.mubr.msk.bf16.mxu0 %vm329_vm1, %v322_v34 }
  0x3c   : > { %2726 = vmatmul.mubr.msk.bf16.gmra.mrb[20].mxu0 %vm329_vm1, %v323_v39 }
  0x3d   : > { %2729 = vmatprep.mubr.msk.bf16.mxu0 %vm329_vm1, %v324_v40 }
  0x44   : > { %2730 = vmatmul.mubr.msk.bf16.gmra.mrb[24].mxu0 %vm329_vm1, %v325_v45 }
  0x45   : > { %2733 = vmatprep.mubr.msk.bf16.mxu0 %vm329_vm1, %v326_v46 }
  0x4c   : > { %2734 = vmatmul.mubr.msk.bf16.gmra.mrb[28].mxu0 %vm329_vm1, %v327_v49 }
  0xe7   : > { %v2707_v51 = vpop.f32.mrb[0].mxu0 }
  0xe8   : > { %v552_v53 = vmul.f32 %v2707_v51, %v3300_v50  ;;  %v416_v54 = vpop.f32.mrb[1].mxu0 }
  0xe9   : > { %v550_v55 = vmul.f32 %v3300_v50, %v416_v54  ;;  %v2708_v56 = vpop.f32.mrb[2].mxu0 }
  0xea   : > { %v3310_v57 = vadd.f32 %v3305_v52, %v552_v53  ;;  %v553_v58 = vmul.f32 %v2708_v56, %v3300_v50  ;;  %v419_v59 = vpop.f32.mrb[3].mxu0 }
  0xeb   : > { %v3314_v60 = vadd.f32 %v3305_v52, %v550_v55  ;;  %v551_v61 = vmul.f32 %v3300_v50, %v419_v59 }
  0xec   : > { %v2512_v62 = vmul.f32 -1.442695, %v3310_v57  ;;  %v3319_v63 = vadd.f32 %v3305_v52, %v553_v58 }
  0xed   : > { %v2510_v0 = vmul.f32 -1.442695, %v3314_v60  ;;  %v3323_v1 = vadd.f32 %v3305_v52, %v551_v61 }
  0xee   : > { %2921 = vpow2.f32 %v2512_v62  ;;  %v2513_v2 = vmul.f32 -1.442695, %v3319_v63 }
  0xef   : > { %2923 = vpow2.f32 %v2510_v0  ;;  %v2511_v3 = vmul.f32 -1.442695, %v3323_v1  ;;  %v2711_v4 = vpop.f32.mrb[4].mxu0 }
  0xf0   : > { %2925 = vpow2.f32 %v2513_v2  ;;  %v556_v5 = vmul.f32 %v2711_v4, %v3300_v50  ;;  %v432_v6 = vpop.f32.mrb[5].mxu0 }
  0xf1   : > { %2927 = vpow2.f32 %v2511_v3  ;;  %v554_v7 = vmul.f32 %v3300_v50, %v432_v6  ;;  %v2712_v8 = vpop.f32.mrb[6].mxu0 }
  0xf2   : > { %v3330_v9 = vadd.f32 %v3305_v52, %v556_v5  ;;  %v557_v10 = vmul.f32 %v2712_v8, %v3300_v50  ;;  %v435_v11 = vpop.f32.mrb[7].mxu0 }
  0xf3   : > { %v3334_v12 = vadd.f32 %v3305_v52, %v554_v7  ;;  %v555_v13 = vmul.f32 %v3300_v50, %v435_v11 }
  0xf4   : > { %v2516_v14 = vmul.f32 -1.442695, %v3330_v9  ;;  %v3339_v15 = vadd.f32 %v3305_v52, %v557_v10 }
  0xf5   : > { %v2514_v16 = vmul.f32 -1.442695, %v3334_v12  ;;  %v3343_v17 = vadd.f32 %v3305_v52, %v555_v13 }
  0xf6   : > { %2929 = vpow2.f32 %v2516_v14  ;;  %v2517_v18 = vmul.f32 -1.442695, %v3339_v15 }
  0xf7   : > { %2931 = vpow2.f32 %v2514_v16  ;;  %v2515_v19 = vmul.f32 -1.442695, %v3343_v17  ;;  %v2715_v20 = vpop.f32.mrb[8].mxu0 }
  0xf8   : > { %v2922_v21 = vpop.eup %2921  ;;  %2933 = vpow2.f32 %v2517_v18  ;;  %v560_v22 = vmul.f32 %v2715_v20, %v3300_v50  ;;  %v448_v23 = vpop.f32.mrb[9].mxu0 }
  0xf9   : > { %v2924_v24 = vpop.eup %2923  ;;  %v719_v25 = vadd.f32 1.0, %v2922_v21  ;;  %2935 = vpow2.f32 %v2515_v19  ;;  %v558_v26 = vmul.f32 %v3300_v50, %v448_v23  ;;  %v2716_v27 = vpop.f32.mrb[10].mxu0 }
  0xfa   : > { %v2926_v28 = vpop.eup %2925  ;;  %v717_v29 = vadd.f32 1.0, %v2924_v24  ;;  %v3350_v30 = vadd.f32 %v3305_v52, %v560_v22  ;;  %v561_v31 = vmul.f32 %v2716_v27, %v3300_v50  ;;  %v451_v32 = vpop.f32.mrb[11].mxu0 }
  0xfb   : > { %v2928_v33 = vpop.eup %2927  ;;  %2937 = vrcp.f32 %v719_v25  ;;  %v720_v34 = vadd.f32 1.0, %v2926_v28  ;;  %v3354_v35 = vadd.f32 %v3305_v52, %v558_v26  ;;  %v559_v36 = vmul.f32 %v3300_v50, %v451_v32 }
  0xfc   : > { %2939 = vrcp.f32 %v717_v29  ;;  %v718_v37 = vadd.f32 1.0, %v2928_v33  ;;  %v2520_v38 = vmul.f32 -1.442695, %v3350_v30  ;;  %v3359_v39 = vadd.f32 %v3305_v52, %v561_v31 }
  0xfd   : > { %2941 = vrcp.f32 %v720_v34  ;;  %v2518_v40 = vmul.f32 -1.442695, %v3354_v35  ;;  %v3363_v41 = vadd.f32 %v3305_v52, %v559_v36 }
  0xfe   : > { %2943 = vrcp.f32 %v718_v37  ;;  %v2521_v42 = vmul.f32 -1.442695, %v3359_v39 }
  0xff   : > { %2945 = vpow2.f32 %v2520_v38  ;;  %v2519_v43 = vmul.f32 -1.442695, %v3363_v41  ;;  %v2719_v44 = vpop.f32.mrb[12].mxu0 }
 0x100   : > { %v2930_v45 = vpop.eup %2929  ;;  %2947 = vpow2.f32 %v2518_v40  ;;  %v564_v46 = vmul.f32 %v2719_v44, %v3300_v50  ;;  %v464_v47 = vpop.f32.mrb[13].mxu0 }
 0x101   : > { %v2932_v48 = vpop.eup %2931  ;;  %v723_v49 = vadd.f32 1.0, %v2930_v45  ;;  %2949 = vpow2.f32 %v2521_v42  ;;  %v562_v51 = vmul.f32 %v3300_v50, %v464_v47  ;;  %v2720_v53 = vpop.f32.mrb[14].mxu0 }
 0x102   : > { %v2934_v54 = vpop.eup %2933  ;;  %v721_v55 = vadd.f32 1.0, %v2932_v48  ;;  %2951 = vpow2.f32 %v2519_v43  ;;  %v3370_v56 = vadd.f32 %v3305_v52, %v564_v46  ;;  %v565_v58 = vmul.f32 %v2720_v53, %v3300_v50  ;;  %v467_v59 = vpop.f32.mrb[15].mxu0 }
 0x103   : > { %v2936_v61 = vpop.eup %2935  ;;  %2953 = vrcp.f32 %v723_v49  ;;  %v724_v62 = vadd.f32 1.0, %v2934_v54  ;;  %v3374_v0 = vadd.f32 %v3305_v52, %v562_v51  ;;  %v563_v2 = vmul.f32 %v3300_v50, %v467_v59 }
 0x104   : > { %2955 = vrcp.f32 %v721_v55  ;;  %v722_v3 = vadd.f32 1.0, %v2936_v61  ;;  %v2524_v4 = vmul.f32 -1.442695, %v3370_v56  ;;  %v3379_v5 = vadd.f32 %v3305_v52, %v565_v58 }
 0x105   : > { %v2938_v6 = vpop.eup %2937  ;;  %2957 = vrcp.f32 %v724_v62  ;;  %v2522_v7 = vmul.f32 -1.442695, %v3374_v0  ;;  %v3383_v8 = vadd.f32 %v3305_v52, %v563_v2 }
 0x106   : > { %v2940_v10 = vpop.eup %2939  ;;  %2959 = vrcp.f32 %v722_v3  ;;  %v2525_v11 = vmul.f32 -1.442695, %v3379_v5  ;;  %v815_v19 = vmul.f32 %v2938_v6, %v3310_v57 }
 0x107   : > { %v2942_v13 = vpop.eup %2941  ;;  %2961 = vpow2.f32 %v2524_v4  ;;  %v2523_v14 = vmul.f32 -1.442695, %v3383_v8  ;;  %v2723_v16 = vpop.f32.mrb[16].mxu0  ;;  %v813_v24 = vmul.f32 %v2940_v10, %v3314_v60 }
 0x108   : > { %v2944_v18 = vpop.eup %2943  ;;  %v816_v20 = vmul.f32 %v2942_v13, %v3319_v63  ;;  %2963 = vpow2.f32 %v2522_v7  ;;  %v568_v21 = vmul.f32 %v2723_v16, %v3300_v50  ;;  %v480_v22 = vpop.f32.mrb[17].mxu0 }
 0x109   : > { %v2946_v23 = vpop.eup %2945  ;;  %v814_v25 = vmul.f32 %v2944_v18, %v3323_v1  ;;  %2965 = vpow2.f32 %v2525_v11  ;;  %v566_v26 = vmul.f32 %v3300_v50, %v480_v22  ;;  %v2724_v27 = vpop.f32.mrb[18].mxu0 }
 0x10a   : > { %v2948_v28 = vpop.eup %2947  ;;  %v727_v29 = vadd.f32 1.0, %v2946_v23  ;;  %2967 = vpow2.f32 %v2523_v14  ;;  %v3394_v57 = vadd.f32 %v3305_v52, %v568_v21  ;;  %v569_v63 = vmul.f32 %v2724_v27, %v3300_v50  ;;  %v483_v31 = vpop.f32.mrb[19].mxu0 }
 0x10b   : > { %v2950_v32 = vpop.eup %2949  ;;  %v725_v33 = vadd.f32 1.0, %v2948_v28  ;;  %v3398_v34 = vadd.f32 %v3305_v52, %v566_v26  ;;  %v567_v60 = vmul.f32 %v3300_v50, %v483_v31  ;;  %v3401_v1 = vpack.c.bf16 %v816_v20, %v815_v19 }
 0x10c   : > { %v2952_v36 = vpop.eup %2951  ;;  %2969 = vrcp.f32 %v727_v29  ;;  %v728_v37 = vadd.f32 1.0, %v2950_v32  ;;  %v2528_v38 = vmul.f32 -1.442695, %v3394_v57  ;;  %v3405_v40 = vadd.f32 %v3305_v52, %v569_v63 }
 0x10d   : > { %v3407_v42 = vpop.eup %2953  ;;  %2971 = vrcp.f32 %v725_v33  ;;  %v726_v43 = vadd.f32 1.0, %v2952_v36  ;;  %v2526_v44 = vmul.f32 -1.442695, %v3398_v34  ;;  %v3411_v45 = vadd.f32 %v3305_v52, %v567_v60  ;;  %1097 = vrot.lane.b32.xlu1 %v3401_v1, %s3185_s13 }
 0x10e   : > { %v2956_v46 = vpop.eup %2955  ;;  %2973 = vrcp.f32 %v728_v37  ;;  %v2529_v47 = vmul.f32 -1.442695, %v3405_v40  ;;  %v3416_v48 = vpack.c.bf16 %v814_v25, %v813_v24 }
 0x10f   : > { %v2958_v49 = vpop.eup %2957  ;;  %2975 = vrcp.f32 %v726_v43  ;;  %v2527_v51 = vmul.f32 -1.442695, %v3411_v45  ;;  %v2727_v53 = vpop.f32.mrb[20].mxu0  ;;  %v817_v55 = vmul.f32 %v2956_v46, %v3334_v12  ;;  %v872_v46 = vshll.u32 %v3401_v1, 16 }
 0x110   : > { %v2960_v54 = vpop.eup %2959  ;;  %2977 = vpow2.f32 %v2528_v38  ;;  %1095 = vrot.lane.b32.xlu0 %v3416_v48, %s3185_s13  ;;  %v572_v58 = vmul.f32 %v2727_v53, %v3300_v50  ;;  %v496_v59 = vpop.f32.mrb[21].mxu0  ;;  %v865_v4 = vshll.u32 %v3416_v48, 16  ;;  %v862_v27 = vshrl.u32 %v3416_v48, 16 }
 0x111   : > { %v2962_v61 = vpop.eup %2961  ;;  %v818_v62 = vmul.f32 %v2960_v54, %v3343_v17  ;;  %2979 = vpow2.f32 %v2526_v44  ;;  %v570_v2 = vmul.f32 %v3300_v50, %v496_v59  ;;  %v2728_v3 = vpop.f32.mrb[22].mxu0  ;;  %v869_v44 = vshrl.u32 %v3401_v1, 16  ;;  %v2919_v1 = vld [vmem:[%s4353_s2 + $0x8] sm:$0x3f]  }
 0x112   : > { %v2964_v6 = vpop.eup %2963  ;;  %v731_v7 = vadd.f32 1.0, %v2962_v61  ;;  %2981 = vpow2.f32 %v2529_v47  ;;  %v3427_v12 = vadd.f32 %v3305_v52, %v572_v58  ;;  %v573_v10 = vmul.f32 %v2728_v3, %v3300_v50  ;;  %v499_v11 = vpop.f32.mrb[23].mxu0  ;;  %2904 = vmatprep.subr.msk.bf16.mxu0 %vm1379_vm6, %v2919_v1 }
 0x113   : > { %v2966_v13 = vpop.eup %2965  ;;  %v729_v14 = vadd.f32 1.0, %v2964_v6  ;;  %2983 = vpow2.f32 %v2527_v51  ;;  %v3431_v17 = vadd.f32 %v3305_v52, %v570_v2  ;;  %v571_v16 = vmul.f32 %v3300_v50, %v499_v11 }
 0x114   : > { %v2968_v18 = vpop.eup %2967  ;;  %2985 = vrcp.f32 %v731_v7  ;;  %v732_v19 = vadd.f32 1.0, %v2966_v13  ;;  %v2532_v20 = vmul.f32 -1.442695, %v3427_v12  ;;  %v3436_v21 = vadd.f32 %v3305_v52, %v573_v10 }
 0x115   : > { %2987 = vrcp.f32 %v729_v14  ;;  %v730_v22 = vadd.f32 1.0, %v2968_v18  ;;  %v2530_v23 = vmul.f32 -1.442695, %v3431_v17  ;;  %v3440_v24 = vadd.f32 %v3305_v52, %v571_v16 }
 0x116   : > { %v3442_v25 = vpop.eup %2969  ;;  %2989 = vrcp.f32 %v732_v19  ;;  %v2533_v26 = vmul.f32 -1.442695, %v3436_v21  ;;  %v1008_v28 = vrot.slane %v865_v4, 1  ;;  %v3455_v32 = vpack.c.bf16 %v818_v62, %v817_v55 }
 0x117   : > { %v2972_v29 = vpop.eup %2971  ;;  %2991 = vrcp.f32 %v730_v22  ;;  %v2531_v63 = vmul.f32 -1.442695, %v3440_v24  ;;  %v2731_v33 = vpop.f32.mrb[24].mxu0  ;;  %v820_v53 = vmul.f32 %v2958_v49, %v3339_v15  ;;  %v1010_v62 = vrot.slane %v872_v46, 1 }
 0x118   : > { %v2974_v60 = vpop.eup %2973  ;;  %2993 = vpow2.f32 %v2532_v20  ;;  %v1009_v36 = vor.u32 %v1008_v28, %v862_v27  ;;  %v576_v37 = vmul.f32 %v2731_v33, %v3300_v50  ;;  %v512_v38 = vpop.f32.mrb[25].mxu0  ;;  %1099 = vrot.lane.b32.xlu1 %v3455_v32, %s3185_s13 }
 0x119   : > { %v2976_v43 = vpop.eup %2975  ;;  %2995 = vpow2.f32 %v2530_v23  ;;  %v2732_v47 = vpop.f32.mrb[26].mxu0  ;;  %v574_v2 = vmul.f32 %v3300_v50, %v512_v38  ;;  %v1011_v13 = vor.u32 %v1010_v62, %v869_v44  ;;  %v819_v23 = vmul.f32 %v3407_v42, %v3330_v9 }
 0x11a   : > { %v2978_v51 = vpop.eup %2977  ;;  %2997 = vpow2.f32 %v2533_v26  ;;  %v1059_v54 = vsel %vm3451_vm4, %v1009_v36, 0  ;;  %v3468_v55 = vadd.f32 %v3305_v52, %v576_v37  ;;  %v515_v58 = vpop.f32.mrb[27].mxu0  ;;  %v577_v6 = vmul.f32 %v2732_v47, %v3300_v50 }
 0x11b   : > { %v2980_v59 = vpop.eup %2979  ;;  %v735_v61 = vadd.f32 1.0, %v2978_v51  ;;  %2999 = vpow2.f32 %v2531_v63  ;;  %1143 = vrot.lane.b32.xlu0 %v1059_v54, %s3186_s14  ;;  %v575_v7 = vmul.f32 %v3300_v50, %v515_v58  ;;  %v3480_v14 = vadd.f32 %v3305_v52, %v574_v2 }
 0x11c   : > { %v2982_v15 = vpop.eup %2981  ;;  %v733_v49 = vadd.f32 1.0, %v2980_v59  ;;  %v2536_v3 = vmul.f32 -1.442695, %v3468_v55  ;;  %v3483_v19 = vadd.f32 %v3305_v52, %v577_v6  ;;  %v1060_v26 = vsel %vm3451_vm4, %v1011_v13, 0 }
 0x11d   : > { %v2984_v10 = vpop.eup %2983  ;;  %3001 = vrcp.f32 %v735_v61  ;;  %v736_v11 = vadd.f32 1.0, %v2982_v15  ;;  %v3486_v20 = vadd.f32 %v3305_v52, %v575_v7  ;;  %v2534_v28 = vmul.f32 -1.442695, %v3480_v14 }
 0x11e   : > { %v2986_v16 = vpop.eup %2985  ;;  %3003 = vrcp.f32 %v733_v49  ;;  %v734_v18 = vadd.f32 1.0, %v2984_v10  ;;  %v2537_v36 = vmul.f32 -1.442695, %v3483_v19  ;;  %v3498_v51 = vpack.c.bf16 %v820_v53, %v819_v23 }
 0x11f   : > { %v3488_v22 = vpop.eup %2987  ;;  %3005 = vrcp.f32 %v736_v11  ;;  %v2735_v63 = vpop.f32.mrb[28].mxu0  ;;  %1145 = vrot.lane.b32.xlu0 %v1060_v26, %s3186_s14  ;;  %v2535_v37 = vmul.f32 -1.442695, %v3486_v20  ;;  %v821_v54 = vmul.f32 %v2972_v29, %v3354_v35  ;;  %v879_v58 = vshll.u32 %v3455_v32, 16 }
 0x120   : > { %v2990_v33 = vpop.eup %2989  ;;  %3007 = vrcp.f32 %v734_v18  ;;  %v528_v38 = vpop.f32.mrb[29].mxu0  ;;  %v580_v59 = vmul.f32 %v2735_v63, %v3300_v50  ;;  %v824_v2 = vmul.f32 %v2974_v60, %v3359_v39  ;;  %v822_v15 = vmul.f32 %v2976_v43, %v3363_v41 }
 0x121   : > { %v2992_v47 = vpop.eup %2991  ;;  %3009 = vpow2.f32 %v2536_v3  ;;  %v2736_v9 = vpop.f32.mrb[30].mxu0  ;;  %v876_v49 = vshrl.u32 %v3455_v32, 16  ;;  %v1012_v35 = vrot.slane %v879_v58, 1  ;;  %v883_v41 = vshrl.u32 %v3498_v51, 16 }
 0x122   : > { %v2994_v42 = vpop.eup %2993  ;;  %3011 = vpow2.f32 %v2534_v28  ;;  %v531_v61 = vpop.f32.mrb[31].mxu0  ;;  %v3511_v29 = vadd.f32 %v3305_v52, %v580_v59  ;;  %v886_v60 = vshll.u32 %v3498_v51, 16  ;;  %v3520_v23 = vpack.c.bf16 %v822_v15, %v821_v54 }
 0x123   : > { %v2996_v62 = vpop.eup %2995  ;;  %3013 = vpow2.f32 %v2537_v36  ;;  %1101 = vrot.lane.b32.xlu0 %v3498_v51, %s3185_s13  ;;  %v739_v7 = vadd.f32 1.0, %v2994_v42  ;;  %v1013_v10 = vor.u32 %v1012_v35, %v876_v49  ;;  %v578_v26 = vmul.f32 %v3300_v50, %v528_v38 }
 0x124   : > { %v2998_v53 = vpop.eup %2997  ;;  %v737_v3 = vadd.f32 1.0, %v2996_v62  ;;  %3015 = vpow2.f32 %v2535_v37  ;;  %v2540_v11 = vmul.f32 -1.442695, %v3511_v29  ;;  %v1014_v18 = vrot.slane %v886_v60, 1 }
 0x125   : > { %v3000_v6 = vpop.eup %2999  ;;  %v740_v39 = vadd.f32 1.0, %v2998_v53  ;;  %v823_v63 = vmul.f32 %v3442_v25, %v3350_v30  ;;  %v1061_v36 = vsel %vm3451_vm4, %v1013_v10, 0  ;;  %v581_v37 = vmul.f32 %v2736_v9, %v3300_v50 }
 0x126   : > { %3017 = vrcp.f32 %v737_v3  ;;  %v738_v43 = vadd.f32 1.0, %v3000_v6  ;;  %v827_v59 = vmul.f32 %v2986_v16, %v3370_v56  ;;  %1147 = vrot.lane.b32.xlu1 %v1061_v36, %s3186_s14  ;;  %v1015_v54 = vor.u32 %v1014_v18, %v883_v41 }
 0x127   : > { %v3002_v13 = vpop.eup %3001  ;;  %3019 = vrcp.f32 %v740_v39  ;;  %v3533_v38 = vadd.f32 %v3305_v52, %v578_v26  ;;  %v3536_v30 = vadd.f32 %v3305_v52, %v581_v37  ;;  %v579_v25 = vmul.f32 %v3300_v50, %v531_v61 }
 0x128   : > { %v3004_v28 = vpop.eup %3003  ;;  %3021 = vrcp.f32 %v738_v43  ;;  %v3539_v9 = vpack.c.bf16 %v824_v2, %v823_v63  ;;  %v825_v56 = vmul.f32 %v3488_v22, %v3374_v0  ;;  %v828_v16 = vmul.f32 %v2990_v33, %v3379_v5 }
 0x129   : > { %v3006_v42 = vpop.eup %3005  ;;  %3023 = vrcp.f32 %v739_v7  ;;  %v1062_v53 = vsel %vm3451_vm4, %v1015_v54, 0  ;;  %v2538_v3 = vmul.f32 -1.442695, %v3533_v38  ;;  %v826_v6 = vmul.f32 %v2992_v47, %v3383_v8 }
 0x12a   : > { %v3008_v62 = vpop.eup %3007  ;;  %3025 = vpow2.f32 %v2540_v11  ;;  %1149 = vrot.lane.b32.xlu0 %v1062_v53, %s3186_s14  ;;  %v3550_v50 = vadd.f32 %v3305_v52, %v579_v25  ;;  %v893_v61 = vshll.u32 %v3520_v23, 16  ;;  %v832_v0 = vmul.f32 %v3006_v42, %v3405_v40  ;;  %1103 = vrot.lane.b32.xlu1 %v3520_v23, %s3185_s13 }
 0x12b   : > { %v3010_v15 = vpop.eup %3009  ;;  %3027 = vpow2.f32 %v2538_v3  ;;  %v890_v22 = vshrl.u32 %v3520_v23, 16  ;;  %v2541_v47 = vmul.f32 -1.442695, %v3536_v30  ;;  %v900_v40 = vshll.u32 %v3539_v9, 16 }
 0x12c   : > { %v3012_v35 = vpop.eup %3011  ;;  %v743_v7 = vadd.f32 1.0, %v3010_v15  ;;  %v1016_v52 = vrot.slane %v893_v61, 1  ;;  %v2539_v43 = vmul.f32 -1.442695, %v3550_v50  ;;  %v830_v11 = vmul.f32 %v3008_v62, %v3411_v45 }
 0x12d   : > { %v3014_v2 = vpop.eup %3013  ;;  %v741_v5 = vadd.f32 1.0, %v3012_v35  ;;  %v3567_v26 = vpack.c.bf16 %v826_v6, %v825_v56  ;;  %v897_v36 = vshrl.u32 %v3539_v9, 16  ;;  %v1018_v37 = vrot.slane %v900_v40, 1 }
 0x12e   : > { %v3016_v33 = vpop.eup %3015  ;;  %3029 = vrcp.f32 %v743_v7  ;;  %v744_v8 = vadd.f32 1.0, %v3014_v2  ;;  %1105 = vrot.lane.b32.xlu0 %v3539_v9, %s3185_s13  ;;  %v1017_v18 = vor.u32 %v1016_v52, %v890_v22  ;;  %v3572_v42 = vpack.c.bf16 %v828_v16, %v827_v59 }
 0x12f   : > { %3031 = vrcp.f32 %v741_v5  ;;  %v742_v39 = vadd.f32 1.0, %v3016_v33  ;;  %v831_v45 = vmul.f32 %v3002_v13, %v3394_v57  ;;  %v829_v62 = vmul.f32 %v3004_v28, %v3398_v34 }
 0x130   : > { %v3018_v10 = vpop.eup %3017  ;;  %3033 = vrcp.f32 %v744_v8  ;;  %v1063_v25 = vsel %vm3451_vm4, %v1017_v18, 0  ;;  %v1019_v53 = vor.u32 %v1018_v37, %v897_v36  ;;  %v907_v59 = vshll.u32 %v3567_v26, 16 }
 0x131   : > { %v3020_v63 = vpop.eup %3019  ;;  %3035 = vrcp.f32 %v742_v39  ;;  %1151 = vrot.lane.b32.xlu1 %v1063_v25, %s3186_s14  ;;  %v833_v57 = vmul.f32 %v3018_v10, %v3431_v17  ;;  %v904_v13 = vshrl.u32 %v3567_v26, 16  ;;  %v914_v28 = vshll.u32 %v3572_v42, 16 }
 0x132   : > { %v3022_v54 = vpop.eup %3021  ;;  %3037 = vpow2.f32 %v2541_v47  ;;  %v836_v34 = vmul.f32 %v3020_v63, %v3436_v21  ;;  %v1020_v3 = vrot.slane %v907_v59, 1  ;;  %v3591_v35 = vpack.c.bf16 %v830_v11, %v829_v62 }
 0x133   : > { %v3024_v15 = vpop.eup %3023  ;;  %v834_v56 = vmul.f32 %v3022_v54, %v3440_v24  ;;  %3039 = vpow2.f32 %v2539_v43  ;;  %v1064_v24 = vsel %vm3451_vm4, %v1019_v53, 0  ;;  %v3593_v6 = vpack.c.bf16 %v832_v0, %v831_v45 }
 0x134   : > { %v3026_v16 = vpop.eup %3025  ;;  %v835_v7 = vmul.f32 %v3024_v15, %v3427_v12  ;;  %1153 = vrot.lane.b32.xlu0 %v1064_v24, %s3186_s14  ;;  %v1022_v17 = vrot.slane %v914_v28, 1  ;;  %v1021_v33 = vor.u32 %v1020_v3, %v904_v13  ;;  %v911_v0 = vshrl.u32 %v3572_v42, 16 }
 0x135   : > { %v3599_v21 = vpack.c.bf16 %v834_v56, %v833_v57  ;;  %v3028_v2 = vpop.eup %3027  ;;  %v747_v5 = vadd.f32 1.0, %v3026_v16  ;;  %1107 = vrot.lane.b32.xlu1 %v3567_v26, %s3185_s13  ;;  %v921_v8 = vshll.u32 %v3591_v35, 16  ;;  %v864_v47 = vrot.slane %v862_v27, 7 }
 0x136   : > { %v3609_v52 = vpack.c.bf16 %v836_v34, %v835_v7  ;;  %v1065_v43 = vsel %vm3451_vm4, %v1021_v33, 0  ;;  %v1023_v10 = vor.u32 %v1022_v17, %v911_v0  ;;  %v928_v18 = vshll.u32 %v3593_v6, 16 }
 0x137   : > { %v1024_v11 = vrot.slane %v921_v8, 1  ;;  %v871_v37 = vrot.slane %v869_v44, 7  ;;  %v878_v54 = vrot.slane %v876_v49, 7  ;;  %v745_v27 = vadd.f32 1.0, %v3028_v2 }
 0x138   : > { %v3030_v12 = vpop.eup %3029  ;;  %1109 = vrot.lane.b32.xlu0 %v3572_v42, %s3185_s13  ;;  %v918_v45 = vshrl.u32 %v3591_v35, 16  ;;  %3041 = vrcp.f32 %v747_v5  ;;  %v885_v15 = vrot.slane %v883_v41, 7  ;;  %v925_v44 = vshrl.u32 %v3593_v6, 16 }
 0x139   : > { %v3032_v39 = vpop.eup %3031  ;;  %1155 = vrot.lane.b32.xlu1 %v1065_v43, %s3186_s14  ;;  %v839_v49 = vmul.f32 %v3030_v12, %v3468_v55  ;;  %v935_v57 = vshll.u32 %v3599_v21, 16  ;;  %v1066_v41 = vsel %vm3451_vm4, %v1023_v10, 0  ;;  %v1026_v3 = vrot.slane %v928_v18, 1 }
 0x13a   : > { %v3034_v63 = vpop.eup %3033  ;;  %v1025_v16 = vor.u32 %v1024_v11, %v918_v45  ;;  %3043 = vrcp.f32 %v745_v27  ;;  %v3651_v33 = vor.u32 %v872_v46, %v871_v37  ;;  %v3655_v12 = vor.u32 %v865_v4, %v864_v47 }
 0x13b   : > { %v3036_v62 = vpop.eup %3035  ;;  %v840_v25 = vmul.f32 %v3034_v63, %v3483_v19  ;;  %v837_v19 = vmul.f32 %v3032_v39, %v3480_v14  ;;  %v1028_v55 = vrot.slane %v935_v57, 1  ;;  %v932_v14 = vshrl.u32 %v3599_v21, 16  ;;  %v2918_v39 = vld [vmem:[%s4353_s2] sm:$0x3f]  }
 0x13c   : > { %v3038_v56 = vpop.eup %3037  ;;  %v838_v53 = vmul.f32 %v3036_v62, %v3486_v20  ;;  %1157 = vrot.lane.b32.xlu0 %v1066_v41, %s3186_s14  ;;  %v942_v20 = vshll.u32 %v3609_v52, 16  ;;  %v1067_v5 = vsel %vm3451_vm4, %v1025_v16, 0  ;;  %v892_v43 = vrot.slane %v890_v22, 7  ;;  %2905 = vmatprep.subr.msk.bf16.mxu1 %vm1379_vm6, %v2918_v39 }
 0x13d   : > { %v3040_v34 = vpop.eup %3039  ;;  %v748_v24 = vadd.f32 1.0, %v3038_v56  ;;  %1111 = vrot.lane.b32.xlu1 %v3591_v35, %s3185_s13  ;;  %v3645_v2 = vpack.c.bf16 %v840_v25, %v839_v49  ;;  %v899_v10 = vrot.slane %v897_v36, 7  ;;  %v1027_v11 = vor.u32 %v1026_v3, %v925_v44 }
 0x13e   : > { %v746_v7 = vadd.f32 1.0, %v3040_v34  ;;  %v3643_v17 = vpack.c.bf16 %v838_v53, %v837_v19  ;;  %v939_v63 = vshrl.u32 %v3609_v52, 16  ;;  %v906_v48 = vrot.slane %v904_v13, 7  ;;  %v2920_v13 = vld [vmem:[%s4353_s2 + $0x10] sm:$0x3f]  }
 0x13f   : > { %3045 = vrcp.f32 %v748_v24  ;;  %v913_v4 = vrot.slane %v911_v0, 7  ;;  %v1029_v46 = vor.u32 %v1028_v55, %v932_v14  ;;  %v1030_v22 = vrot.slane %v942_v20, 1 }
 0x140   : > { %3047 = vrcp.f32 %v746_v7  ;;  %1113 = vrot.lane.b32.xlu0 %v3593_v6, %s3185_s13  ;;  %v920_v36 = vrot.slane %v918_v45, 7  ;;  %v927_v47 = vrot.slane %v925_v44, 7  ;;  %v946_v37 = vshrl.u32 %v3643_v17, 16 }
 0x141   : > { %1159 = vrot.lane.b32.xlu1 %v1067_v5, %s3186_s14  ;;  %v949_v27 = vshll.u32 %v3643_v17, 16  ;;  %v934_v0 = vrot.slane %v932_v14, 7  ;;  %v953_v62 = vshrl.u32 %v3645_v2, 16  ;;  %v3683_v25 = vor.u32 %v879_v58, %v878_v54 }
 0x142   : > { %v3042_v56 = vpop.eup %3041  ;;  %v1068_v45 = vsel %vm3451_vm4, %v1027_v11, 0  ;;  %v941_v44 = vrot.slane %v939_v63, 7  ;;  %v1598_v49 = vsel %vm1379_vm6, %v2918_v39, 0  ;;  %v3691_v53 = vor.u32 %v886_v60, %v885_v15 }
 0x143   : > { %v1069_v32 = vsel %vm3451_vm4, %v1029_v46, 0  ;;  %v1031_v58 = vor.u32 %v1030_v22, %v939_v63  ;;  %2772 = vmatpush3.bf16.msra.mxu1 %v1598_v49  ;;  %v1381_v54 = vsel %vm1379_vm6, %v2919_v1, 0  ;;  %v1032_v16 = vrot.slane %v949_v27, 1 }
 0x144   : > { %1161 = vrot.lane.b32.xlu0 %v1068_v45, %s3186_s14  ;;  %v948_v34 = vrot.slane %v946_v37, 7  ;;  %v3187_v19 = vmov 0   ;;  %2906 = vmatprep.subr.msk.bf16.mxu1 %vm1379_vm6, %v2920_v13  ;;  %v3704_v51 = vsel %vm1379_vm6, %v2920_v13, 0  ;;  %v3708_v60 = vor.u32 %v893_v61, %v892_v43  ;;  %v3044_v15 = vpop.eup %3043 }
 0x145   : > { %1115 = vrot.lane.b32.xlu1 %v3599_v21, %s3185_s13  ;;  %1076 = vst.msk [vmem:[#allocation2] sm:$0xff] %vm1075_vm5, %v3187_v19  ;;  %1078 = vst.msk [vmem:[#allocation2 + $0x88] sm:$0xff] %vm1075_vm5, %v3187_v19  ;;  %v955_v24 = vrot.slane %v953_v62, 7  ;;  %2738 = vmatpush3.bf16.msra.mxu0 %v1381_v54  ;;  %v3714_v41 = vor.u32 %v900_v40, %v899_v10  ;;  %v3718_v3 = vor.u32 %v907_v59, %v906_v48 }
 0x146   : > { %v3722_v7 = vor.u32 %v914_v28, %v913_v4  ;;  %v956_v61 = vshll.u32 %v3645_v2, 16  ;;  %v3727_v55 = vor.u32 %v921_v8, %v920_v36  ;;  %v3731_v9 = vor.u32 %v928_v18, %v927_v47 }
 0x147   : > { %v3735_v40 = vor.u32 %v935_v57, %v934_v0  ;;  %v843_v42 = vmul.f32 %v3042_v56, %v3511_v29  ;;  %v841_v28 = vmul.f32 %v3044_v15, %v3533_v38  ;;  %v1033_v6 = vor.u32 %v1032_v16, %v946_v37 }
 0x148   : > { %1117 = vrot.lane.b32.xlu0 %v3609_v52, %s3185_s13  ;;  %v3746_v21 = vor.u32 %v942_v20, %v941_v44  ;;  %v3748_v18 = vor.u32 %v949_v27, %v948_v34  ;;  %v3750_v29 = vor.u32 %v956_v61, %v955_v24  ;;  %v1034_v57 = vrot.slane %v956_v61, 1 }
 0x149   : > { %v3046_v23 = vpop.eup %3045  ;;  %1163 = vrot.lane.b32.xlu1 %v1069_v32, %s3186_s14  ;;  %v1071_v39 = vsel %vm3451_vm4, %v1033_v6, 0  ;;  %v992_v31 = vsel %vm3767_vm9, 0, %v3655_v12  ;;  %v993_v44 = vsel %vm3767_vm9, 0, %v3651_v33  ;;  %v994_v33 = vsel %vm3767_vm9, 0, %v3683_v25 }
 0x14a   : > { %v3048_v26 = vpop.eup %3047  ;;  %v844_v59 = vmul.f32 %v3046_v23, %v3536_v30  ;;  %v1070_v30 = vsel %vm3451_vm4, %v1031_v58, 0  ;;  %v1035_v11 = vor.u32 %v1034_v57, %v953_v62 }
 0x14b   : > { %v842_v35 = vmul.f32 %v3048_v26, %v3550_v50 }
 0x14c   : > { %v860_v8 = vpack.c.bf16 %v844_v59, %v843_v42  ;;  %1165 = vrot.lane.b32.xlu0 %v1070_v30, %s3186_s14  ;;  %v1289_v5 = vld [vmem:[#allocation2] sm:$0xff]  ;;  %v996_v59 = vsel %vm3767_vm9, 0, %v3708_v60  ;;  %v1777_v46 = vld [vmem:[#allocation2 + $0x88] sm:$0xff] }
 0x14d   : > { %v859_v14 = vpack.c.bf16 %v842_v35, %v841_v28  ;;  %1119 = vrot.lane.b32.xlu1 %v3643_v17, %s3185_s13  ;;  %2773 = vmatprep.mubr.msk.bf16.mxu1 %vm1075_vm5, %v1289_v5 }
 0x14e   : > { %v967_v38 = vshrl.u32 %v860_v8, 16  ;;  %v970_v50 = vshll.u32 %v860_v8, 16 }
 0x14f   : > { %v960_v52 = vshrl.u32 %v859_v14, 16  ;;  %v963_v20 = vshll.u32 %v859_v14, 16 }
 0x150   : > { %v969_v43 = vrot.slane %v967_v38, 7  ;;  %v1038_v10 = vrot.slane %v970_v50, 1  ;;  %1121 = vrot.lane.b32.xlu0 %v3645_v2, %s3185_s13  ;;  %v1072_v2 = vsel %vm3451_vm4, %v1035_v11, 0 }
 0x151   : > { %v1036_v63 = vrot.slane %v963_v20, 1  ;;  %v962_v1 = vrot.slane %v960_v52, 7  ;;  %1167 = vrot.lane.b32.xlu1 %v1071_v39, %s3186_s14 }
 0x152   : > { %v1039_v17 = vor.u32 %v1038_v10, %v967_v38  ;;  %v3764_v48 = vor.u32 %v970_v50, %v969_v43  ;;  %v999_v43 = vsel %vm3767_vm9, 0, %v3722_v7  ;;  %v1000_v7 = vsel %vm3767_vm9, 0, %v3727_v55 }
 0x153   : > { %v1037_v4 = vor.u32 %v1036_v63, %v960_v52  ;;  %v3771_v22 = vor.u32 %v963_v20, %v962_v1 }
 0x154   : > { %v1074_v36 = vsel %vm3451_vm4, %v1039_v17, 0  ;;  %v1007_v47 = vsel %vm3767_vm9, 0, %v3764_v48  ;;  %1169 = vrot.lane.b32.xlu0 %v1072_v2, %s3186_s14 }
 0x155   : > { %v1073_v37 = vsel %vm3451_vm4, %v1037_v4, 0  ;;  %v1006_v27 = vsel %vm3767_vm9, 0, %v3771_v22  ;;  %1123 = vrot.lane.b32.xlu1 %v859_v14, %s3185_s13 }
 0x158   : > { %1125 = vrot.lane.b32.xlu0 %v860_v8, %s3185_s13  ;;  %v997_v8 = vsel %vm3767_vm9, 0, %v3714_v41  ;;  %v998_v41 = vsel %vm3767_vm9, 0, %v3718_v3 }
 0x159   : > { %1171 = vrot.lane.b32.xlu1 %v1073_v37, %s3186_s14 }
 0x15d   : > { %1173 = vrot.lane.b32.xlu1 %v1074_v36, %s3186_s14 }
 0x17f   : > { %v1098_v45 = vpop.permute.xlu1 %1097 }
 0x180   : > { %v1181_v49 = vsel %vm1175_vm10, %v993_v44, %v1098_v45 }
 0x182   : > { %v1096_v13 = vpop.permute.xlu0 %1095 }
 0x183   : > { %v1178_v0 = vsel %vm1175_vm10, %v992_v31, %v1096_v13  ;;  %v1001_v13 = vsel %vm3767_vm9, 0, %v3731_v9  ;;  %v1002_v9 = vsel %vm3767_vm9, 0, %v3735_v40 }
 0x18a   : > { %v1100_v54 = vpop.permute.xlu1 %1099 }
 0x18b   : > { %v1184_v34 = vsel %vm1175_vm10, %v994_v33, %v1100_v54 }
 0x18d   : > { %v1144_v62 = vpop.permute.xlu0 %1143 }
 0x18e   : > { %v1225_v56 = vsel %vm329_vm1, %v1178_v0, %v1144_v62 }
 0x18f   : > { %1273 = vst.msk [vmem:[#allocation2 + $0x8] sm:$0xff] %vm1075_vm5, %v1225_v56 }
 0x191   : > { %v1146_v32 = vpop.permute.xlu0 %1145 }
 0x192   : > { %v1228_v58 = vsel %vm329_vm1, %v1181_v49, %v1146_v32 }
 0x193   : > { %1274 = vst.msk [vmem:[#allocation2 + $0x10] sm:$0xff] %vm1075_vm5, %v1228_v58 }
 0x195   : > { %v1102_v16 = vpop.permute.xlu0 %1101 }
 0x196   : > { %v1307_v12 = vld [vmem:[#allocation2 + $0x8] sm:$0xff] }
 0x197   : > { %2739 = vmatprep.mubr.msk.bf16.mxu0 %vm1075_vm5, %v1307_v12  ;;  %2774 = vmatmul.mubr.msk.bf16.vlgmr.msra.gmra.mrb[0].mxu1 %vm1075_vm5, %v1307_v12  ;;  %v1003_v12 = vsel %vm3767_vm9, 0, %v3746_v21  ;;  %v1004_v21 = vsel %vm3767_vm9, 0, %v3748_v18 }
 0x198   : > { %2806 = vmatpush3.bf16.msra.mxu1 %v3704_v51  ;;  %v1148_v19 = vpop.permute.xlu1 %1147  ;;  %v995_v51 = vsel %vm3767_vm9, 0, %v3691_v53 }
 0x199   : > { %v1231_v24 = vsel %vm329_vm1, %v1184_v34, %v1148_v19  ;;  %v1187_v25 = vsel %vm1175_vm10, %v995_v51, %v1102_v16 }
 0x19a   : > { %v3809_v15 = vld [vmem:[#allocation2 + $0x10] sm:$0xff]  ;;  %1275 = vst.msk [vmem:[#allocation2 + $0x18] sm:$0xff] %vm1075_vm5, %v1231_v24 }
 0x19b   : > { %2740 = vmatmul.mubr.msk.bf16.vlgmr.msra.gmra.mrb[32].mxu0 %vm1075_vm5, %v3809_v15  ;;  %2777 = vmatprep.mubr.msk.bf16.mxu1 %vm1075_vm5, %v3809_v15 }
 0x19c   : > { %v1150_v23 = vpop.permute.xlu0 %1149  ;;  %v1104_v26 = vpop.permute.xlu1 %1103 }
 0x19d   : > { %v1234_v61 = vsel %vm329_vm1, %v1187_v25, %v1150_v23  ;;  %v1190_v35 = vsel %vm1175_vm10, %v996_v59, %v1104_v26 }
 0x19e   : > { %1276 = vst.msk [vmem:[#allocation2 + $0x20] sm:$0xff] %vm1075_vm5, %v1234_v61  ;;  %v1005_v61 = vsel %vm3767_vm9, 0, %v3750_v29 }
 0x1a0   : > { %v1106_v42 = vpop.permute.xlu0 %1105 }
 0x1a1   : > { %v3826_v28 = vld [vmem:[#allocation2 + $0x18] sm:$0xff]  ;;  %v1193_v30 = vsel %vm1175_vm10, %v997_v8, %v1106_v42 }
 0x1a2   : > { %2743 = vmatprep.mubr.msk.bf16.mxu0 %vm1075_vm5, %v3826_v28  ;;  %2778 = vmatmul.mubr.msk.bf16.gmra.mrb[4].mxu1 %vm1075_vm5, %v3826_v28 }
 0x1a3   : > { %v1152_v53 = vpop.permute.xlu1 %1151 }
 0x1a4   : > { %v1237_v6 = vsel %vm329_vm1, %v1190_v35, %v1152_v53 }
 0x1a5   : > { %1277 = vst.msk [vmem:[#allocation2 + $0x28] sm:$0xff] %vm1075_vm5, %v1237_v6  ;;  %v3838_v60 = vld [vmem:[#allocation2 + $0x20] sm:$0xff] }
 0x1a6   : > { %v1154_v57 = vpop.permute.xlu0 %1153  ;;  %2744 = vmatmul.mubr.msk.bf16.gmra.mrb[36].mxu0 %vm1075_vm5, %v3838_v60  ;;  %2781 = vmatprep.mubr.msk.bf16.mxu1 %vm1075_vm5, %v3838_v60 }
 0x1a7   : > { %v1240_v14 = vsel %vm329_vm1, %v1193_v30, %v1154_v57  ;;  %v1108_v38 = vpop.permute.xlu1 %1107 }
 0x1a8   : > { %1278 = vst.msk [vmem:[#allocation2 + $0x30] sm:$0xff] %vm1075_vm5, %v1240_v14  ;;  %v1196_v5 = vsel %vm1175_vm10, %v998_v41, %v1108_v38 }
 0x1aa   : > { %v1110_v50 = vpop.permute.xlu0 %1109 }
 0x1ab   : > { %v1156_v52 = vpop.permute.xlu1 %1155  ;;  %v1199_v3 = vsel %vm1175_vm10, %v999_v43, %v1110_v50 }
 0x1ac   : > { %v1243_v20 = vsel %vm329_vm1, %v1196_v5, %v1156_v52  ;;  %v3852_v39 = vld [vmem:[#allocation2 + $0x28] sm:$0xff] }
 0x1ad   : > { %1279 = vst.msk [vmem:[#allocation2 + $0x38] sm:$0xff] %vm1075_vm5, %v1243_v20  ;;  %2747 = vmatprep.mubr.msk.bf16.mxu0 %vm1075_vm5, %v3852_v39  ;;  %2782 = vmatmul.mubr.msk.bf16.gmra.mrb[8].mxu1 %vm1075_vm5, %v3852_v39 }
 0x1ae   : > { %v1158_v10 = vpop.permute.xlu0 %1157 }
 0x1af   : > { %v1246_v11 = vsel %vm329_vm1, %v1199_v3, %v1158_v10  ;;  %v1112_v63 = vpop.permute.xlu1 %1111  ;;  %v3864_v1 = vld [vmem:[#allocation2 + $0x30] sm:$0xff] }
 0x1b0   : > { %1280 = vst.msk [vmem:[#allocation2 + $0x40] sm:$0xff] %vm1075_vm5, %v1246_v11  ;;  %2748 = vmatmul.mubr.msk.bf16.gmra.mrb[40].mxu0 %vm1075_vm5, %v3864_v1  ;;  %2785 = vmatprep.mubr.msk.bf16.mxu1 %vm1075_vm5, %v3864_v1  ;;  %v1202_v4 = vsel %vm1175_vm10, %v1000_v7, %v1112_v63 }
 0x1b2   : > { %v1114_v17 = vpop.permute.xlu0 %1113 }
 0x1b3   : > { %v1160_v36 = vpop.permute.xlu1 %1159  ;;  %v1205_v55 = vsel %vm1175_vm10, %v1001_v13, %v1114_v17 }
 0x1b4   : > { %v1249_v2 = vsel %vm329_vm1, %v1202_v4, %v1160_v36  ;;  %v3876_v37 = vld [vmem:[#allocation2 + $0x38] sm:$0xff] }
 0x1b5   : > { %1281 = vst.msk [vmem:[#allocation2 + $0x48] sm:$0xff] %vm1075_vm5, %v1249_v2  ;;  %2751 = vmatprep.mubr.msk.bf16.mxu0 %vm1075_vm5, %v3876_v37  ;;  %2786 = vmatmul.mubr.msk.bf16.gmra.mrb[12].mxu1 %vm1075_vm5, %v3876_v37 }
 0x1b6   : > { %v1162_v31 = vpop.permute.xlu0 %1161 }
 0x1b7   : > { %v1252_v0 = vsel %vm329_vm1, %v1205_v55, %v1162_v31  ;;  %v1116_v62 = vpop.permute.xlu1 %1115  ;;  %v3888_v56 = vld [vmem:[#allocation2 + $0x40] sm:$0xff] }
 0x1b8   : > { %1282 = vst.msk [vmem:[#allocation2 + $0x50] sm:$0xff] %vm1075_vm5, %v1252_v0  ;;  %2752 = vmatmul.mubr.msk.bf16.gmra.mrb[44].mxu0 %vm1075_vm5, %v3888_v56  ;;  %2789 = vmatprep.mubr.msk.bf16.mxu1 %vm1075_vm5, %v3888_v56  ;;  %v1208_v44 = vsel %vm1175_vm10, %v1002_v9, %v1116_v62 }
 0x1ba   : > { %v1118_v45 = vpop.permute.xlu0 %1117 }
 0x1bb   : > { %v1164_v49 = vpop.permute.xlu1 %1163  ;;  %v1211_v54 = vsel %vm1175_vm10, %v1003_v12, %v1118_v45 }
 0x1bc   : > { %v1255_v32 = vsel %vm329_vm1, %v1208_v44, %v1164_v49  ;;  %v1315_v58 = vld [vmem:[#allocation2 + $0x48] sm:$0xff] }
 0x1bd   : > { %1283 = vst.msk [vmem:[#allocation2 + $0x58] sm:$0xff] %vm1075_vm5, %v1255_v32  ;;  %2755 = vmatprep.mubr.msk.bf16.mxu0 %vm1075_vm5, %v1315_v58  ;;  %2790 = vmatmul.mubr.msk.bf16.gmra.mrb[16].mxu1 %vm1075_vm5, %v1315_v58 }
 0x1be   : > { %v1166_v40 = vpop.permute.xlu0 %1165 }
 0x1bf   : > { %v1258_v16 = vsel %vm329_vm1, %v1211_v54, %v1166_v40  ;;  %v1120_v33 = vpop.permute.xlu1 %1119  ;;  %v1316_v34 = vld [vmem:[#allocation2 + $0x50] sm:$0xff]  ;;  %v4027_v40 = vld [vmem:[%s4357_s6] ss:$0 sm:$0xff] }
 0x1c0   : > { %1284 = vst.msk [vmem:[#allocation2 + $0x60] sm:$0xff] %vm1075_vm5, %v1258_v16  ;;  %2756 = vmatmul.mubr.msk.bf16.gmra.mrb[48].mxu0 %vm1075_vm5, %v1316_v34  ;;  %2793 = vmatprep.mubr.msk.bf16.mxu1 %vm1075_vm5, %v1316_v34  ;;  %v1214_v24 = vsel %vm1175_vm10, %v1004_v21, %v1120_v33 }
 0x1c2   : > { %v1122_v19 = vpop.permute.xlu0 %1121 }
 0x1c3   : > { %v1168_v51 = vpop.permute.xlu1 %1167  ;;  %v1217_v26 = vsel %vm1175_vm10, %v1005_v61, %v1122_v19 }
 0x1c4   : > { %v1261_v25 = vsel %vm329_vm1, %v1214_v24, %v1168_v51  ;;  %v1317_v23 = vld [vmem:[#allocation2 + $0x58] sm:$0xff] }
 0x1c5   : > { %1285 = vst.msk [vmem:[#allocation2 + $0x68] sm:$0xff] %vm1075_vm5, %v1261_v25  ;;  %2759 = vmatprep.mubr.msk.bf16.mxu0 %vm1075_vm5, %v1317_v23  ;;  %2794 = vmatmul.mubr.msk.bf16.gmra.mrb[20].mxu1 %vm1075_vm5, %v1317_v23 }
 0x1c6   : > { %v1170_v18 = vpop.permute.xlu0 %1169 }
 0x1c7   : > { %v1264_v42 = vsel %vm329_vm1, %v1217_v26, %v1170_v18  ;;  %v1124_v59 = vpop.permute.xlu1 %1123  ;;  %v1318_v35 = vld [vmem:[#allocation2 + $0x60] sm:$0xff] }
 0x1c8   : > { %1286 = vst.msk [vmem:[#allocation2 + $0x70] sm:$0xff] %vm1075_vm5, %v1264_v42  ;;  %2760 = vmatmul.mubr.msk.bf16.gmra.mrb[52].mxu0 %vm1075_vm5, %v1318_v35  ;;  %2797 = vmatprep.mubr.msk.bf16.mxu1 %vm1075_vm5, %v1318_v35  ;;  %v1220_v29 = vsel %vm1175_vm10, %v1006_v27, %v1124_v59 }
 0x1ca   : > { %v1126_v6 = vpop.permute.xlu0 %1125 }
 0x1cb   : > { %v1172_v53 = vpop.permute.xlu1 %1171  ;;  %v1223_v57 = vsel %vm1175_vm10, %v1007_v47, %v1126_v6 }
 0x1cc   : > { %v1267_v8 = vsel %vm329_vm1, %v1220_v29, %v1172_v53  ;;  %v1319_v30 = vld [vmem:[#allocation2 + $0x68] sm:$0xff] }
 0x1cd   : > { %1287 = vst.msk [vmem:[#allocation2 + $0x78] sm:$0xff] %vm1075_vm5, %v1267_v8  ;;  %2763 = vmatprep.mubr.msk.bf16.mxu0 %vm1075_vm5, %v1319_v30  ;;  %2798 = vmatmul.mubr.msk.bf16.gmra.mrb[24].mxu1 %vm1075_vm5, %v1319_v30 }
 0x1cf   : > { %v1174_v22 = vpop.permute.xlu1 %1173  ;;  %v1320_v14 = vld [vmem:[#allocation2 + $0x70] sm:$0xff] }
 0x1d0   : > { %v1270_v27 = vsel %vm329_vm1, %v1223_v57, %v1174_v22  ;;  %2764 = vmatmul.mubr.msk.bf16.gmra.mrb[56].mxu0 %vm1075_vm5, %v1320_v14  ;;  %2801 = vmatprep.mubr.msk.bf16.mxu1 %vm1075_vm5, %v1320_v14 }
 0x1d1   : > { %1288 = vst.msk [vmem:[#allocation2 + $0x80] sm:$0xff] %vm1075_vm5, %v1270_v27 }
 0x1d4   : > { %v1321_v38 = vld [vmem:[#allocation2 + $0x78] sm:$0xff] }
 0x1d5   : > { %2767 = vmatprep.mubr.msk.bf16.mxu0 %vm1075_vm5, %v1321_v38  ;;  %2802 = vmatmul.mubr.msk.bf16.gmra.mrb[28].mxu1 %vm1075_vm5, %v1321_v38 }
 0x1d6   : > { %2807 = vmatprep.mubr.msk.bf16.mxu1 %vm1075_vm5, %v3809_v15 }
 0x1d8   : > { %v1322_v48 = vld [vmem:[#allocation2 + $0x80] sm:$0xff] }
 0x1d9   : > { %2768 = vmatmul.mubr.msk.bf16.gmra.mrb[60].mxu0 %vm1075_vm5, %v1322_v48 }
 0x1dd   : > { %2808 = vmatmul.mubr.msk.bf16.vlgmr.msra.gmra.mrb[0].mxu1 %vm1075_vm5, %v3826_v28 }
 0x1de   : > { %2811 = vmatprep.mubr.msk.bf16.mxu1 %vm1075_vm5, %v3838_v60 }
 0x1e5   : > { %2812 = vmatmul.mubr.msk.bf16.gmra.mrb[4].mxu1 %vm1075_vm5, %v3852_v39 }
 0x1e6   : > { %2815 = vmatprep.mubr.msk.bf16.mxu1 %vm1075_vm5, %v3864_v1 }
 0x1ed   : > { %2816 = vmatmul.mubr.msk.bf16.gmra.mrb[8].mxu1 %vm1075_vm5, %v3876_v37 }
 0x1ee   : > { %2819 = vmatprep.mubr.msk.bf16.mxu1 %vm1075_vm5, %v3888_v56 }
 0x1f5   : > { %2820 = vmatmul.mubr.msk.bf16.gmra.mrb[12].mxu1 %vm1075_vm5, %v1315_v58  ;;  %v4022_v58 = vld [vmem:[%s4356_s5] ss:$0 sm:$0xff] }
 0x1f6   : > { %2823 = vmatprep.mubr.msk.bf16.mxu1 %vm1075_vm5, %v1316_v34 }
 0x1fd   : > { %2824 = vmatmul.mubr.msk.bf16.gmra.mrb[16].mxu1 %vm1075_vm5, %v1317_v23 }
 0x1fe   : > { %2827 = vmatprep.mubr.msk.bf16.mxu1 %vm1075_vm5, %v1318_v35 }
 0x205   : > { %2828 = vmatmul.mubr.msk.bf16.gmra.mrb[20].mxu1 %vm1075_vm5, %v1319_v30 }
 0x206   : > { %2831 = vmatprep.mubr.msk.bf16.mxu1 %vm1075_vm5, %v1320_v14 }
 0x20d   : > { %2832 = vmatmul.mubr.msk.bf16.gmra.mrb[24].mxu1 %vm1075_vm5, %v1321_v38 }
 0x20e   : > { %2835 = vmatprep.mubr.msk.bf16.mxu1 %vm1075_vm5, %v1322_v48 }
 0x215   : > { %2836 = vmatmul.mubr.msk.bf16.gmra.mrb[28].mxu1 %vm1075_vm5, %v1777_v46 }
 0x26e   : > { %v2741_v47 = vpop.f32.mrb[32].mxu0 }
 0x26f   : > { %v1417_v15 = vpop.f32.mrb[33].mxu0 }
 0x270   : > { %v2742_v28 = vpop.f32.mrb[34].mxu0 }
 0x271   : > { %v1420_v60 = vpop.f32.mrb[35].mxu0 }
 0x279   : > { %v2745_v41 = vpop.f32.mrb[36].mxu0 }
 0x27a   : > { %v1433_v50 = vpop.f32.mrb[37].mxu0 }
 0x27b   : > { %v2746_v5 = vpop.f32.mrb[38].mxu0 }
 0x27c   : > { %v1436_v52 = vpop.f32.mrb[39].mxu0 }
 0x283   : > { %v3971_v20 = vpop.f32.mrb[40].mxu0 }
 0x284   : > { %v3973_v39 = vpop.f32.mrb[41].mxu0 }
 0x285   : > { %v3975_v43 = vpop.f32.mrb[42].mxu0 }
 0x286   : > { %v3977_v3 = vpop.f32.mrb[43].mxu0 }
 0x28b   : > { %v3979_v10 = vpop.f32.mrb[44].mxu0 }
 0x28c   : > { %v3981_v11 = vpop.f32.mrb[45].mxu0 }
 0x28d   : > { %v3983_v63 = vpop.f32.mrb[46].mxu0 }
 0x28e   : > { %v3985_v1 = vpop.f32.mrb[47].mxu0 }
 0x293   : > { %v3987_v7 = vpop.f32.mrb[48].mxu0 }
 0x294   : > { %v3989_v17 = vpop.f32.mrb[49].mxu0 }
 0x295   : > { %v3991_v4 = vpop.f32.mrb[50].mxu0 }
 0x296   : > { %v3993_v36 = vpop.f32.mrb[51].mxu0 }
 0x29b   : > { %v3995_v2 = vpop.f32.mrb[52].mxu0 }
 0x29c   : > { %v3997_v37 = vpop.f32.mrb[53].mxu0 }
 0x29d   : > { %v3999_v13 = vpop.f32.mrb[54].mxu0 }
 0x29e   : > { %v4001_v55 = vpop.f32.mrb[55].mxu0 }
 0x2a3   : > { %v4003_v31 = vpop.f32.mrb[56].mxu0 }
 0x2a4   : > { %v4005_v0 = vpop.f32.mrb[57].mxu0 }
 0x2a5   : > { %v4007_v62 = vpop.f32.mrb[58].mxu0 }
 0x2a6   : > { %v4009_v56 = vpop.f32.mrb[59].mxu0 }
 0x2ac   : > { %v4011_v9 = vpop.f32.mrb[60].mxu0 }
 0x2ad   : > { %v4013_v45 = vpop.f32.mrb[61].mxu0 }
 0x2ae   : > { %v4015_v44 = vpop.f32.mrb[62].mxu0 }
 0x2af   : > { %v4017_v49 = vpop.f32.mrb[63].mxu0 }
 0x2b0   : > { %v2809_v32 = vpop.f32.mrb[0].mxu1 }
 0x2b1   : > { %v2839_v12 = vadd.f32 %v2809_v32, %v2741_v47  ;;  %v1871_v54 = vpop.f32.mrb[1].mxu1 }
 0x2b2   : > { %v2840_v16 = vadd.f32 %v1871_v54, %v1417_v15  ;;  %v2810_v33 = vpop.f32.mrb[2].mxu1 }
 0x2b3   : > { %v2039_v34 = vmul.f32 %v2839_v12, %v4022_v58  ;;  %v2841_v21 = vadd.f32 %v2810_v33, %v2742_v28  ;;  %v1874_v19 = vpop.f32.mrb[3].mxu1 }
 0x2b4   : > { %v2037_v24 = vmul.f32 %v2840_v16, %v4022_v58  ;;  %v2842_v51 = vadd.f32 %v1874_v19, %v1420_v60 }
 0x2b5   : > { %v4032_v25 = vadd.f32 %v4027_v40, %v2039_v34  ;;  %v2040_v23 = vmul.f32 %v2841_v21, %v4022_v58 }
 0x2b6   : > { %v4036_v61 = vadd.f32 %v4027_v40, %v2037_v24  ;;  %v2038_v26 = vmul.f32 %v2842_v51, %v4022_v58 }
 0x2b7   : > { %v2601_v18 = vmul.f32 -1.442695, %v4032_v25  ;;  %v4041_v42 = vadd.f32 %v4027_v40, %v2040_v23 }
 0x2b8   : > { %v2599_v59 = vmul.f32 -1.442695, %v4036_v61  ;;  %v4045_v35 = vadd.f32 %v4027_v40, %v2038_v26  ;;  %v2813_v29 = vpop.f32.mrb[4].mxu1 }
 0x2b9   : > { %3049 = vpow2.f32 %v2601_v18  ;;  %v2602_v53 = vmul.f32 -1.442695, %v4041_v42  ;;  %v2843_v6 = vadd.f32 %v2813_v29, %v2745_v41  ;;  %v1887_v8 = vpop.f32.mrb[5].mxu1 }
 0x2ba   : > { %3051 = vpow2.f32 %v2599_v59  ;;  %v2600_v30 = vmul.f32 -1.442695, %v4045_v35  ;;  %v2844_v57 = vadd.f32 %v1887_v8, %v1433_v50  ;;  %v2814_v22 = vpop.f32.mrb[6].mxu1 }
 0x2bb   : > { %3053 = vpow2.f32 %v2602_v53  ;;  %v2043_v14 = vmul.f32 %v2843_v6, %v4022_v58  ;;  %v2845_v27 = vadd.f32 %v2814_v22, %v2746_v5  ;;  %v1890_v38 = vpop.f32.mrb[7].mxu1 }
 0x2bc   : > { %3055 = vpow2.f32 %v2600_v30  ;;  %v2041_v48 = vmul.f32 %v2844_v57, %v4022_v58  ;;  %v2846_v46 = vadd.f32 %v1890_v38, %v1436_v52 }
 0x2bd   : > { %v4052_v47 = vadd.f32 %v4027_v40, %v2043_v14  ;;  %v2044_v15 = vmul.f32 %v2845_v27, %v4022_v58 }
 0x2be   : > { %v4056_v28 = vadd.f32 %v4027_v40, %v2041_v48  ;;  %v2042_v60 = vmul.f32 %v2846_v46, %v4022_v58 }
 0x2bf   : > { %v2605_v41 = vmul.f32 -1.442695, %v4052_v47  ;;  %v4061_v50 = vadd.f32 %v4027_v40, %v2044_v15 }
 0x2c0   : > { %v2603_v5 = vmul.f32 -1.442695, %v4056_v28  ;;  %v4065_v32 = vadd.f32 %v4027_v40, %v2042_v60  ;;  %v2817_v52 = vpop.f32.mrb[8].mxu1 }
 0x2c1   : > { %3057 = vpow2.f32 %v2605_v41  ;;  %v2606_v12 = vmul.f32 -1.442695, %v4061_v50  ;;  %v2847_v54 = vadd.f32 %v2817_v52, %v3971_v20  ;;  %v1903_v16 = vpop.f32.mrb[9].mxu1 }
 0x2c2   : > { %3059 = vpow2.f32 %v2603_v5  ;;  %v2604_v33 = vmul.f32 -1.442695, %v4065_v32  ;;  %v2848_v34 = vadd.f32 %v1903_v16, %v3973_v39  ;;  %v2818_v21 = vpop.f32.mrb[10].mxu1 }
 0x2c3   : > { %v3050_v19 = vpop.eup %3049  ;;  %3061 = vpow2.f32 %v2606_v12  ;;  %v2047_v24 = vmul.f32 %v2847_v54, %v4022_v58  ;;  %v2849_v51 = vadd.f32 %v2818_v21, %v3975_v43  ;;  %v1906_v23 = vpop.f32.mrb[11].mxu1 }
 0x2c4   : > { %v3052_v26 = vpop.eup %3051  ;;  %v2206_v18 = vadd.f32 1.0, %v3050_v19  ;;  %3063 = vpow2.f32 %v2604_v33  ;;  %v2045_v59 = vmul.f32 %v2848_v34, %v4022_v58  ;;  %v2850_v20 = vadd.f32 %v1906_v23, %v3977_v3 }
 0x2c5   : > { %v3054_v29 = vpop.eup %3053  ;;  %v2204_v53 = vadd.f32 1.0, %v3052_v26  ;;  %v4076_v6 = vadd.f32 %v4027_v40, %v2047_v24  ;;  %v2048_v39 = vmul.f32 %v2849_v51, %v4022_v58 }
 0x2c6   : > { %v3056_v8 = vpop.eup %3055  ;;  %3065 = vrcp.f32 %v2206_v18  ;;  %v2207_v30 = vadd.f32 1.0, %v3054_v29  ;;  %v4080_v43 = vadd.f32 %v4027_v40, %v2045_v59  ;;  %v2046_v57 = vmul.f32 %v2850_v20, %v4022_v58 }
 0x2c7   : > { %3067 = vrcp.f32 %v2204_v53  ;;  %v2205_v22 = vadd.f32 1.0, %v3056_v8  ;;  %v2609_v14 = vmul.f32 -1.442695, %v4076_v6  ;;  %v4085_v3 = vadd.f32 %v4027_v40, %v2048_v39  ;;  %v2334_v39 = vld [vmem:[%s3247_s8 + $0x10] sm:$0xff] }
 0x2c8   : > { %3069 = vrcp.f32 %v2207_v30  ;;  %v2607_v27 = vmul.f32 -1.442695, %v4080_v43  ;;  %v4089_v38 = vadd.f32 %v4027_v40, %v2046_v57  ;;  %v2821_v48 = vpop.f32.mrb[12].mxu1 }
 0x2c9   : > { %3071 = vrcp.f32 %v2205_v22  ;;  %v2610_v46 = vmul.f32 -1.442695, %v4085_v3  ;;  %v2851_v15 = vadd.f32 %v2821_v48, %v3979_v10  ;;  %v1919_v60 = vpop.f32.mrb[13].mxu1 }
 0x2ca   : > { %3073 = vpow2.f32 %v2609_v14  ;;  %v2608_v41 = vmul.f32 -1.442695, %v4089_v38  ;;  %v2852_v5 = vadd.f32 %v1919_v60, %v3981_v11  ;;  %v2822_v52 = vpop.f32.mrb[14].mxu1 }
 0x2cb   : > { %v3058_v12 = vpop.eup %3057  ;;  %3075 = vpow2.f32 %v2607_v27  ;;  %v2051_v54 = vmul.f32 %v2851_v15, %v4022_v58  ;;  %v2853_v16 = vadd.f32 %v2822_v52, %v3983_v63  ;;  %v1922_v33 = vpop.f32.mrb[15].mxu1  ;;  %v2332_v27 = vld [vmem:[%s3247_s8] sm:$0xff] }
 0x2cc   : > { %v3060_v34 = vpop.eup %3059  ;;  %v2210_v21 = vadd.f32 1.0, %v3058_v12  ;;  %3077 = vpow2.f32 %v2610_v46  ;;  %v2049_v19 = vmul.f32 %v2852_v5, %v4022_v58  ;;  %v2854_v10 = vadd.f32 %v1922_v33, %v3985_v1  ;;  %v2335_v5 = vld [vmem:[%s3247_s8 + $0x18] sm:$0xff]  ;;  %v2333_v33 = vld [vmem:[%s3247_s8 + $0x8] sm:$0xff] }
 0x2cd   : > { %v3062_v24 = vpop.eup %3061  ;;  %v2208_v51 = vadd.f32 1.0, %v3060_v34  ;;  %3079 = vpow2.f32 %v2608_v41  ;;  %v4100_v11 = vadd.f32 %v4027_v40, %v2051_v54  ;;  %v2052_v23 = vmul.f32 %v2853_v16, %v4022_v58 }
 0x2ce   : > { %v3064_v26 = vpop.eup %3063  ;;  %3081 = vrcp.f32 %v2210_v21  ;;  %v2211_v63 = vadd.f32 1.0, %v3062_v24  ;;  %v4104_v18 = vadd.f32 %v4027_v40, %v2049_v19  ;;  %v2050_v59 = vmul.f32 %v2854_v10, %v4022_v58 }
 0x2cf   : > { %3083 = vrcp.f32 %v2208_v51  ;;  %v2209_v1 = vadd.f32 1.0, %v3064_v26  ;;  %v2613_v20 = vmul.f32 -1.442695, %v4100_v11  ;;  %v4109_v29 = vadd.f32 %v4027_v40, %v2052_v23 }
 0x2d0   : > { %v3066_v53 = vpop.eup %3065  ;;  %3085 = vrcp.f32 %v2211_v63  ;;  %v2611_v8 = vmul.f32 -1.442695, %v4104_v18  ;;  %v4114_v30 = vadd.f32 %v4027_v40, %v2050_v59  ;;  %v2825_v57 = vpop.f32.mrb[16].mxu1 }
 0x2d1   : > { %v3068_v22 = vpop.eup %3067  ;;  %v2302_v14 = vmul.f32 %v3066_v53, %v4032_v25  ;;  %3087 = vrcp.f32 %v2209_v1  ;;  %v2614_v48 = vmul.f32 -1.442695, %v4109_v29  ;;  %v2855_v46 = vadd.f32 %v2825_v57, %v3987_v7  ;;  %v1935_v15 = vpop.f32.mrb[17].mxu1 }
 0x2d2   : > { %v3070_v60 = vpop.eup %3069  ;;  %v2300_v41 = vmul.f32 %v3068_v22, %v4036_v61  ;;  %3089 = vpow2.f32 %v2613_v20  ;;  %v2612_v25 = vmul.f32 -1.442695, %v4114_v30  ;;  %v2856_v52 = vadd.f32 %v1935_v15, %v3989_v17  ;;  %v2826_v12 = vpop.f32.mrb[18].mxu1  ;;  %v2338_v22 = vld [vmem:[%s3247_s8 + $0x30] sm:$0xff] }
 0x2d3   : > { %v3072_v54 = vpop.eup %3071  ;;  %v2366_v7 = vadd.f32 %v2334_v39, %v2302_v14  ;;  %v2303_v16 = vmul.f32 %v3070_v60, %v4041_v42  ;;  %3091 = vpow2.f32 %v2611_v8  ;;  %v2055_v34 = vmul.f32 %v2855_v46, %v4022_v58  ;;  %v1938_v21 = vpop.f32.mrb[19].mxu1  ;;  %v2336_v60 = vld [vmem:[%s3247_s8 + $0x20] sm:$0xff] }
 0x2d4   : > { %v3074_v19 = vpop.eup %3073  ;;  %v2364_v61 = vadd.f32 %v2332_v27, %v2300_v41  ;;  %v2301_v10 = vmul.f32 %v3072_v54, %v4045_v35  ;;  %3093 = vpow2.f32 %v2614_v48  ;;  %v2053_v24 = vmul.f32 %v2856_v52, %v4022_v58 }
 0x2d5   : > { %v3076_v17 = vpop.eup %3075  ;;  %2398 = vst.msk [vmem:[%s4125_s30 + $0x10] sm:$0xff] %vm329_vm1, %v2366_v7  ;;  %v2367_v51 = vadd.f32 %v2335_v5, %v2303_v16  ;;  %v2214_v23 = vadd.f32 1.0, %v3074_v19  ;;  %3095 = vpow2.f32 %v2612_v25  ;;  %v4139_v42 = vadd.f32 %v4027_v40, %v2055_v34 }
 0x2d6   : > { %v3078_v26 = vpop.eup %3077  ;;  %2396 = vst.msk [vmem:[%s4125_s30] sm:$0xff] %vm329_vm1, %v2364_v61  ;;  %v2365_v63 = vadd.f32 %v2333_v33, %v2301_v10  ;;  %v2212_v35 = vadd.f32 1.0, %v3076_v17  ;;  %v4144_v59 = vadd.f32 %v4027_v40, %v2053_v24  ;;  %v2857_v1 = vadd.f32 %v2826_v12, %v3991_v4  ;;  %v2339_v12 = vld [vmem:[%s3247_s8 + $0x38] sm:$0xff] }
 0x2d7   : > { %v3080_v20 = vpop.eup %3079  ;;  %2399 = vst.msk [vmem:[%s4125_s30 + $0x18] sm:$0xff] %vm329_vm1, %v2367_v51  ;;  %3097 = vrcp.f32 %v2214_v23  ;;  %v2215_v53 = vadd.f32 1.0, %v3078_v26  ;;  %v2617_v39 = vmul.f32 -1.442695, %v4139_v42  ;;  %v2858_v8 = vadd.f32 %v1938_v21, %v3993_v36  ;;  %v2337_v21 = vld [vmem:[%s3247_s8 + $0x28] sm:$0xff] }
 0x2d8   : > { %v3082_v57 = vpop.eup %3081  ;;  %2397 = vst.msk [vmem:[%s4125_s30 + $0x8] sm:$0xff] %vm329_vm1, %v2365_v63  ;;  %3099 = vrcp.f32 %v2212_v35  ;;  %v2213_v14 = vadd.f32 1.0, %v3080_v20  ;;  %v2615_v27 = vmul.f32 -1.442695, %v4144_v59  ;;  %v2056_v4 = vmul.f32 %v2857_v1, %v4022_v58  ;;  %v2829_v48 = vpop.f32.mrb[20].mxu1 }
 0x2d9   : > { %v3084_v46 = vpop.eup %3083  ;;  %v2306_v15 = vmul.f32 %v3082_v57, %v4052_v47  ;;  %3101 = vrcp.f32 %v2215_v53  ;;  %v2054_v36 = vmul.f32 %v2858_v8, %v4022_v58  ;;  %v2859_v41 = vadd.f32 %v2829_v48, %v3995_v2  ;;  %v1951_v5 = vpop.f32.mrb[21].mxu1 }
 0x2da   : > { %v3086_v25 = vpop.eup %3085  ;;  %v2304_v52 = vmul.f32 %v3084_v46, %v4056_v28  ;;  %3103 = vrcp.f32 %v2213_v14  ;;  %v4163_v54 = vadd.f32 %v4027_v40, %v2056_v4  ;;  %v2860_v7 = vadd.f32 %v1951_v5, %v3997_v37  ;;  %v2830_v47 = vpop.f32.mrb[22].mxu1  ;;  %v2342_v4 = vld [vmem:[%s3247_s8 + $0x50] sm:$0xff] }
 0x2db   : > { %v3088_v16 = vpop.eup %3087  ;;  %v2370_v33 = vadd.f32 %v2338_v22, %v2306_v15  ;;  %v2307_v34 = vmul.f32 %v3086_v25, %v4061_v50  ;;  %3105 = vpow2.f32 %v2617_v39  ;;  %v4169_v2 = vadd.f32 %v4027_v40, %v2054_v36  ;;  %v1954_v28 = vpop.f32.mrb[23].mxu1 }
 0x2dc   : > { %v3090_v19 = vpop.eup %3089  ;;  %v2368_v61 = vadd.f32 %v2336_v60, %v2304_v52  ;;  %v2305_v10 = vmul.f32 %v3088_v16, %v4065_v32  ;;  %3107 = vpow2.f32 %v2615_v27  ;;  %v2618_v37 = vmul.f32 -1.442695, %v4163_v54 }
 0x2dd   : > { %v3092_v24 = vpop.eup %3091  ;;  %2402 = vst.msk [vmem:[%s4125_s30 + $0x30] sm:$0xff] %vm329_vm1, %v2370_v33  ;;  %v2371_v17 = vadd.f32 %v2339_v12, %v2307_v34  ;;  %v2218_v50 = vadd.f32 1.0, %v3090_v19  ;;  %v2616_v51 = vmul.f32 -1.442695, %v4169_v2  ;;  %v2059_v23 = vmul.f32 %v2859_v41, %v4022_v58  ;;  %v2340_v41 = vld [vmem:[%s3247_s8 + $0x40] sm:$0xff] }
 0x2de   : > { %v3094_v26 = vpop.eup %3093  ;;  %2400 = vst.msk [vmem:[%s4125_s30 + $0x20] sm:$0xff] %vm329_vm1, %v2368_v61  ;;  %v2369_v63 = vadd.f32 %v2337_v21, %v2305_v10  ;;  %v2216_v35 = vadd.f32 1.0, %v3092_v24  ;;  %3109 = vpow2.f32 %v2618_v37  ;;  %v2057_v32 = vmul.f32 %v2860_v7, %v4022_v58  ;;  %v2343_v7 = vld [vmem:[%s3247_s8 + $0x58] sm:$0xff]  ;;  %v2341_v21 = vld [vmem:[%s3247_s8 + $0x48] sm:$0xff] }
 0x2df   : > { %v3096_v1 = vpop.eup %3095  ;;  %2403 = vst.msk [vmem:[%s4125_s30 + $0x38] sm:$0xff] %vm329_vm1, %v2371_v17  ;;  %3111 = vrcp.f32 %v2218_v50  ;;  %v2219_v20 = vadd.f32 1.0, %v3094_v26  ;;  %v4183_v53 = vadd.f32 %v4027_v40, %v2059_v23  ;;  %v2861_v39 = vadd.f32 %v2830_v47, %v3999_v13 }
 0x2e0   : > { %2401 = vst.msk [vmem:[%s4125_s30 + $0x28] sm:$0xff] %vm329_vm1, %v2369_v63  ;;  %3113 = vrcp.f32 %v2216_v35  ;;  %v2217_v8 = vadd.f32 1.0, %v3096_v1  ;;  %v4189_v57 = vadd.f32 %v4027_v40, %v2057_v32  ;;  %v2862_v22 = vadd.f32 %v1954_v28, %v4001_v55  ;;  %v2833_v14 = vpop.f32.mrb[24].mxu1 }
 0x2e1   : > { %v3098_v27 = vpop.eup %3097  ;;  %3115 = vrcp.f32 %v2219_v20  ;;  %v2621_v48 = vmul.f32 -1.442695, %v4183_v53  ;;  %v2060_v46 = vmul.f32 %v2861_v39, %v4022_v58  ;;  %v2863_v13 = vadd.f32 %v2833_v14, %v4003_v31  ;;  %v1967_v15 = vpop.f32.mrb[25].mxu1  ;;  %v2346_v39 = vld [vmem:[%s3247_s8 + $0x70] sm:$0xff] }
 0x2e2   : > { %v3100_v60 = vpop.eup %3099  ;;  %v2310_v36 = vmul.f32 %v3098_v27, %v4076_v6  ;;  %3117 = vrcp.f32 %v2217_v8  ;;  %v2619_v55 = vmul.f32 -1.442695, %v4189_v57  ;;  %v2058_v5 = vmul.f32 %v2862_v22, %v4022_v58  ;;  %v2834_v25 = vpop.f32.mrb[26].mxu1 }
 0x2e3   : > { %v3102_v52 = vpop.eup %3101  ;;  %v2308_v12 = vmul.f32 %v3100_v60, %v4080_v43  ;;  %3119 = vpow2.f32 %v2616_v51  ;;  %v4203_v31 = vadd.f32 %v4027_v40, %v2060_v46  ;;  %v2063_v47 = vmul.f32 %v2863_v13, %v4022_v58  ;;  %v1970_v6 = vpop.f32.mrb[27].mxu1  ;;  %v2347_v60 = vld [vmem:[%s3247_s8 + $0x78] sm:$0xff] }
 0x2e4   : > { %v3104_v16 = vpop.eup %3103  ;;  %v2374_v33 = vadd.f32 %v2342_v4, %v2310_v36  ;;  %v2311_v34 = vmul.f32 %v3102_v52, %v4085_v3  ;;  %3121 = vpow2.f32 %v2621_v48  ;;  %v4209_v28 = vadd.f32 %v4027_v40, %v2058_v5 }
 0x2e5   : > { %v3106_v43 = vpop.eup %3105  ;;  %v2372_v19 = vadd.f32 %v2340_v41, %v2308_v12  ;;  %v2309_v61 = vmul.f32 %v3104_v16, %v4089_v38  ;;  %3123 = vpow2.f32 %v2619_v55  ;;  %v2622_v10 = vmul.f32 -1.442695, %v4203_v31 }
 0x2e6   : > { %v3108_v37 = vpop.eup %3107  ;;  %2406 = vst.msk [vmem:[%s4125_s30 + $0x50] sm:$0xff] %vm329_vm1, %v2374_v33  ;;  %v2375_v24 = vadd.f32 %v2343_v7, %v2311_v34  ;;  %v2222_v17 = vadd.f32 1.0, %v3106_v43  ;;  %v2620_v3 = vmul.f32 -1.442695, %v4209_v28  ;;  %v4217_v50 = vadd.f32 %v4027_v40, %v2063_v47 }
 0x2e7   : > { %2404 = vst.msk [vmem:[%s4125_s30 + $0x40] sm:$0xff] %vm329_vm1, %v2372_v19  ;;  %v2373_v51 = vadd.f32 %v2341_v21, %v2309_v61  ;;  %v2220_v23 = vadd.f32 1.0, %v3108_v37  ;;  %3125 = vpow2.f32 %v2622_v10  ;;  %v2864_v38 = vadd.f32 %v1967_v15, %v4005_v0 }
 0x2e8   : > { %v3110_v26 = vpop.eup %3109  ;;  %2407 = vst.msk [vmem:[%s4125_s30 + $0x58] sm:$0xff] %vm329_vm1, %v2375_v24  ;;  %3127 = vrcp.f32 %v2222_v17  ;;  %v2625_v63 = vmul.f32 -1.442695, %v4217_v50  ;;  %v2865_v35 = vadd.f32 %v2834_v25, %v4007_v62  ;;  %v2866_v32 = vadd.f32 %v1970_v6, %v4009_v56  ;;  %v2837_v1 = vpop.f32.mrb[28].mxu1  ;;  %v2344_v62 = vld [vmem:[%s3247_s8 + $0x60] sm:$0xff]  ;;  %v2345_v25 = vld [vmem:[%s3247_s8 + $0x68] sm:$0xff] }
 0x2e9   : > { %v3112_v20 = vpop.eup %3111  ;;  %2405 = vst.msk [vmem:[%s4125_s30 + $0x48] sm:$0xff] %vm329_vm1, %v2373_v51  ;;  %3129 = vrcp.f32 %v2220_v23  ;;  %v2223_v8 = vadd.f32 1.0, %v3110_v26  ;;  %v2061_v0 = vmul.f32 %v2864_v38, %v4022_v58  ;;  %v2867_v22 = vadd.f32 %v2837_v1, %v4011_v9  ;;  %v1983_v14 = vpop.f32.mrb[29].mxu1  ;;  %v2350_v23 = vld [vmem:[%s3247_s8 + $0x90] sm:$0xff] }
 0x2ea   : > { %v3114_v27 = vpop.eup %3113  ;;  %v2314_v4 = vmul.f32 %v3112_v20, %v4100_v11  ;;  %3131 = vpow2.f32 %v2620_v3  ;;  %v2064_v56 = vmul.f32 %v2865_v35, %v4022_v58  ;;  %v2062_v48 = vmul.f32 %v2866_v32, %v4022_v58  ;;  %v2838_v46 = vpop.f32.mrb[30].mxu1  ;;  %v2348_v32 = vld [vmem:[%s3247_s8 + $0x80] sm:$0xff] }
 0x2eb   : > { %v3116_v13 = vpop.eup %3115  ;;  %v2312_v15 = vmul.f32 %v3114_v27, %v4104_v18  ;;  %3133 = vrcp.f32 %v2223_v8  ;;  %v4239_v9 = vadd.f32 %v4027_v40, %v2061_v0  ;;  %v2067_v36 = vmul.f32 %v2867_v22, %v4022_v58  ;;  %v1986_v11 = vpop.f32.mrb[31].mxu1  ;;  %v2351_v22 = vld [vmem:[%s3247_s8 + $0x98] sm:$0xff] }
 0x2ec   : > { %v3118_v41 = vpop.eup %3117  ;;  %v2378_v55 = vadd.f32 %v2346_v39, %v2314_v4  ;;  %v2315_v5 = vmul.f32 %v3116_v13, %v4109_v29  ;;  %3135 = vpow2.f32 %v2625_v63  ;;  %v4245_v52 = vadd.f32 %v4027_v40, %v2064_v56 }
 0x2ed   : > { %v3120_v18 = vpop.eup %3119  ;;  %v2376_v12 = vadd.f32 %v2344_v62, %v2312_v15  ;;  %v2313_v7 = vmul.f32 %v3118_v41, %v4114_v30  ;;  %v2623_v47 = vmul.f32 -1.442695, %v4239_v9  ;;  %v4250_v6 = vadd.f32 %v4027_v40, %v2062_v48  ;;  %v2354_v41 = vld [vmem:[%s3247_s8 + $0xb0] sm:$0xff] }
 0x2ee   : > { %v3122_v16 = vpop.eup %3121  ;;  %2410 = vst.msk [vmem:[%s4125_s30 + $0x70] sm:$0xff] %vm329_vm1, %v2378_v55  ;;  %v2379_v29 = vadd.f32 %v2347_v60, %v2315_v5  ;;  %v2221_v33 = vadd.f32 1.0, %v3120_v18  ;;  %v4255_v34 = vadd.f32 %v4027_v40, %v2067_v36  ;;  %v2626_v19 = vmul.f32 -1.442695, %v4245_v52  ;;  %v2349_v60 = vld [vmem:[%s3247_s8 + $0x88] sm:$0xff] }
 0x2ef   : > { %v3124_v21 = vpop.eup %3123  ;;  %2408 = vst.msk [vmem:[%s4125_s30 + $0x60] sm:$0xff] %vm329_vm1, %v2376_v12  ;;  %v2377_v43 = vadd.f32 %v2345_v25, %v2313_v7  ;;  %v2226_v30 = vadd.f32 1.0, %v3122_v16  ;;  %3137 = vpow2.f32 %v2623_v47  ;;  %v2868_v10 = vadd.f32 %v1983_v14, %v4013_v45  ;;  %v2352_v25 = vld [vmem:[%s3247_s8 + $0xa0] sm:$0xff] }
 0x2f0   : > { %2411 = vst.msk [vmem:[%s4125_s30 + $0x78] sm:$0xff] %vm329_vm1, %v2379_v29  ;;  %3139 = vrcp.f32 %v2221_v33  ;;  %v2224_v61 = vadd.f32 1.0, %v3124_v21  ;;  %v2624_v24 = vmul.f32 -1.442695, %v4250_v6  ;;  %v2869_v17 = vadd.f32 %v2838_v46, %v4015_v44  ;;  %v2355_v29 = vld [vmem:[%s3247_s8 + $0xb8] sm:$0xff] }
 0x2f1   : > { %v3126_v37 = vpop.eup %3125  ;;  %2409 = vst.msk [vmem:[%s4125_s30 + $0x68] sm:$0xff] %vm329_vm1, %v2377_v43  ;;  %3141 = vrcp.f32 %v2226_v30  ;;  %v2870_v3 = vadd.f32 %v1986_v11, %v4017_v49  ;;  %v2629_v26 = vmul.f32 -1.442695, %v4255_v34  ;;  %v2065_v63 = vmul.f32 %v2868_v10, %v4022_v58 }
 0x2f2   : > { %v3128_v51 = vpop.eup %3127  ;;  %3143 = vrcp.f32 %v2224_v61  ;;  %v2227_v38 = vadd.f32 1.0, %v3126_v37  ;;  %v2068_v1 = vmul.f32 %v2869_v17, %v4022_v58  ;;  %v2353_v61 = vld [vmem:[%s3247_s8 + $0xa8] sm:$0xff] }
 0x2f3   : > { %v3130_v45 = vpop.eup %3129  ;;  %v2318_v35 = vmul.f32 %v3128_v51, %v4139_v42  ;;  %3145 = vpow2.f32 %v2626_v19  ;;  %v2066_v44 = vmul.f32 %v2870_v3, %v4022_v58  ;;  %v4277_v39 = vadd.f32 %v4027_v40, %v2065_v63 }
 0x2f4   : > { %v3132_v49 = vpop.eup %3131  ;;  %v2316_v20 = vmul.f32 %v3130_v45, %v4144_v59  ;;  %3147 = vrcp.f32 %v2227_v38  ;;  %v4281_v42 = vadd.f32 %v4027_v40, %v2068_v1 }
 0x2f5   : > { %v3134_v8 = vpop.eup %3133  ;;  %v2382_v0 = vadd.f32 %v2350_v23, %v2318_v35  ;;  %v2225_v14 = vadd.f32 1.0, %v3132_v49  ;;  %3149 = vpow2.f32 %v2624_v24  ;;  %v2627_v59 = vmul.f32 -1.442695, %v4277_v39  ;;  %v2356_v35 = vld [vmem:[%s3247_s8 + $0xc0] sm:$0xff]  ;;  %v2359_v49 = vld [vmem:[%s3247_s8 + $0xd8] sm:$0xff] }
 0x2f6   : > { %v3136_v27 = vpop.eup %3135  ;;  %v2380_v4 = vadd.f32 %v2348_v32, %v2316_v20  ;;  %v2319_v58 = vmul.f32 %v3134_v8, %v4163_v54  ;;  %3151 = vpow2.f32 %v2629_v26  ;;  %v2630_v56 = vmul.f32 -1.442695, %v4281_v42 }
 0x2f7   : > { %2414 = vst.msk [vmem:[%s4125_s30 + $0x90] sm:$0xff] %vm329_vm1, %v2382_v0  ;;  %3153 = vrcp.f32 %v2225_v14  ;;  %v2230_v62 = vadd.f32 1.0, %v3136_v27  ;;  %v4289_v48 = vadd.f32 %v4027_v40, %v2066_v44  ;;  %v2357_v0 = vld [vmem:[%s3247_s8 + $0xc8] sm:$0xff]  ;;  %v2362_v27 = vld [vmem:[%s3247_s8 + $0xf0] sm:$0xff] }
 0x2f8   : > { %2412 = vst.msk [vmem:[%s4125_s30 + $0x80] sm:$0xff] %vm329_vm1, %v2380_v4  ;;  %v2383_v46 = vadd.f32 %v2351_v22, %v2319_v58  ;;  %3155 = vpow2.f32 %v2627_v59 }
 0x2f9   : > { %v3138_v54 = vpop.eup %3137  ;;  %3157 = vrcp.f32 %v2230_v62  ;;  %v2628_v13 = vmul.f32 -1.442695, %v4289_v48  ;;  %v2360_v62 = vld [vmem:[%s3247_s8 + $0xe0] sm:$0xff] }
 0x2fa   : > { %v3140_v15 = vpop.eup %3139  ;;  %2415 = vst.msk [vmem:[%s4125_s30 + $0x98] sm:$0xff] %vm329_vm1, %v2383_v46  ;;  %v2228_v36 = vadd.f32 1.0, %v3138_v54  ;;  %3159 = vpow2.f32 %v2630_v56  ;;  %v2363_v54 = vld [vmem:[%s3247_s8 + $0xf8] sm:$0xff] }
 0x2fb   : > { %v3142_v11 = vpop.eup %3141  ;;  %v2317_v40 = vmul.f32 %v3140_v15, %v4169_v2  ;;  %3161 = vpow2.f32 %v2628_v13  ;;  %v2361_v15 = vld [vmem:[%s3247_s8 + $0xe8] sm:$0xff] }
 0x2fc   : > { %v3144_v55 = vpop.eup %3143  ;;  %v2322_v5 = vmul.f32 %v3142_v11, %v4183_v53  ;;  %3163 = vrcp.f32 %v2228_v36 }
 0x2fd   : > { %v3146_v18 = vpop.eup %3145  ;;  %v2381_v12 = vadd.f32 %v2349_v60, %v2317_v40  ;;  %v2320_v7 = vmul.f32 %v3144_v55, %v4189_v57 }
 0x2fe   : > { %v3148_v47 = vpop.eup %3147  ;;  %v2386_v16 = vadd.f32 %v2354_v41, %v2322_v5  ;;  %v2231_v33 = vadd.f32 1.0, %v3146_v18 }
 0x2ff   : > { %v3150_v21 = vpop.eup %3149  ;;  %2413 = vst.msk [vmem:[%s4125_s30 + $0x88] sm:$0xff] %vm329_vm1, %v2381_v12  ;;  %v2384_v2 = vadd.f32 %v2352_v25, %v2320_v7  ;;  %v2323_v53 = vmul.f32 %v3148_v47, %v4203_v31  ;;  %v2358_v31 = vld [vmem:[%s3247_s8 + $0xd0] sm:$0xff] }
 0x300   : > { %v3152_v43 = vpop.eup %3151  ;;  %2418 = vst.msk [vmem:[%s4125_s30 + $0xb0] sm:$0xff] %vm329_vm1, %v2386_v16  ;;  %3165 = vrcp.f32 %v2231_v33  ;;  %v2229_v30 = vadd.f32 1.0, %v3150_v21 }
 0x301   : > { %v3154_v19 = vpop.eup %3153  ;;  %2416 = vst.msk [vmem:[%s4125_s30 + $0xa0] sm:$0xff] %vm329_vm1, %v2384_v2  ;;  %v2387_v57 = vadd.f32 %v2355_v29, %v2323_v53  ;;  %v2234_v10 = vadd.f32 1.0, %v3152_v43 }
 0x302   : > { %v3156_v37 = vpop.eup %3155  ;;  %v2321_v24 = vmul.f32 %v3154_v19, %v4209_v28  ;;  %3167 = vrcp.f32 %v2229_v30 }
 0x303   : > { %v3158_v17 = vpop.eup %3157  ;;  %2419 = vst.msk [vmem:[%s4125_s30 + $0xb8] sm:$0xff] %vm329_vm1, %v2387_v57  ;;  %3169 = vrcp.f32 %v2234_v10  ;;  %v2232_v3 = vadd.f32 1.0, %v3156_v37 }
 0x304   : > { %v3160_v51 = vpop.eup %3159  ;;  %v2385_v23 = vadd.f32 %v2353_v61, %v2321_v24  ;;  %v2326_v38 = vmul.f32 %v3158_v17, %v4217_v50 }
 0x305   : > { %v3162_v26 = vpop.eup %3161  ;;  %3171 = vrcp.f32 %v2232_v3  ;;  %v2235_v63 = vadd.f32 1.0, %v3160_v51 }
 0x306   : > { %v3164_v28 = vpop.eup %3163  ;;  %2417 = vst.msk [vmem:[%s4125_s30 + $0xa8] sm:$0xff] %vm329_vm1, %v2385_v23  ;;  %v2390_v45 = vadd.f32 %v2358_v31, %v2326_v38  ;;  %v2233_v32 = vadd.f32 1.0, %v3162_v26 }
 0x307   : > { %v2324_v1 = vmul.f32 %v3164_v28, %v4239_v9  ;;  %3173 = vrcp.f32 %v2235_v63 }
 0x308   : > { %2422 = vst.msk [vmem:[%s4125_s30 + $0xd0] sm:$0xff] %vm329_vm1, %v2390_v45  ;;  %3175 = vrcp.f32 %v2233_v32 }
 0x309   : > { %v2388_v50 = vadd.f32 %v2356_v35, %v2324_v1 }
 0x30a   : > { %v3166_v44 = vpop.eup %3165 }
 0x30b   : > { %2420 = vst.msk [vmem:[%s4125_s30 + $0xc0] sm:$0xff] %vm329_vm1, %v2388_v50  ;;  %v2327_v20 = vmul.f32 %v3166_v44, %v4245_v52 }
 0x30c   : > { %v3168_v8 = vpop.eup %3167 }
 0x30d   : > { %v3170_v22 = vpop.eup %3169  ;;  %v2391_v9 = vadd.f32 %v2359_v49, %v2327_v20  ;;  %v2325_v14 = vmul.f32 %v3168_v8, %v4250_v6 }
 0x30e   : > { %v2330_v4 = vmul.f32 %v3170_v22, %v4255_v34 }
 0x30f   : > { %v3172_v58 = vpop.eup %3171  ;;  %2423 = vst.msk [vmem:[%s4125_s30 + $0xd8] sm:$0xff] %vm329_vm1, %v2391_v9  ;;  %v2389_v59 = vadd.f32 %v2357_v0, %v2325_v14 }
 0x310   : > { %v2394_v52 = vadd.f32 %v2362_v27, %v2330_v4  ;;  %v2328_v56 = vmul.f32 %v3172_v58, %v4277_v39 }
 0x311   : > { %v3174_v46 = vpop.eup %3173  ;;  %2421 = vst.msk [vmem:[%s4125_s30 + $0xc8] sm:$0xff] %vm329_vm1, %v2389_v59 }
 0x312   : > { %v3176_v6 = vpop.eup %3175  ;;  %2426 = vst.msk [vmem:[%s4125_s30 + $0xf0] sm:$0xff] %vm329_vm1, %v2394_v52  ;;  %v2392_v13 = vadd.f32 %v2360_v62, %v2328_v56  ;;  %v2331_v34 = vmul.f32 %v3174_v46, %v4281_v42 }
 0x313   : > { %v2329_v60 = vmul.f32 %v3176_v6, %v4289_v48 }
 0x314   : > { %2424 = vst.msk [vmem:[%s4125_s30 + $0xe0] sm:$0xff] %vm329_vm1, %v2392_v13  ;;  %v2395_v36 = vadd.f32 %v2363_v54, %v2331_v34 }
 0x315   : > { %v2393_v11 = vadd.f32 %v2361_v15, %v2329_v60 }
 0x316   : > { %2427 = vst.msk [vmem:[%s4125_s30 + $0xf8] sm:$0xff] %vm329_vm1, %v2395_v36 }
 0x317   : > { %2425 = vst.msk [vmem:[%s4125_s30 + $0xe8] sm:$0xff] %vm329_vm1, %v2393_v11 }
 0x318 PF: > { %s17_s24 = sadd.s32 1, %s3183_s24  }
 0x319   : > { %p14_p4 = scmp.ge.s32.totalorder %s17_s24, 4  }
 0x31b   :  { %16 = sbr.rel (!%p14_p4) target bundleno = 1 (0x1), region = 83 }

</bundles_post_ra>
